<compile_context>
chip_gen: v7x
topology: tpu7x:2x2x1
jax: 0.10.0
libtpu: 0.0.40
codegen_flags: <defaults>
</compile_context>

<pallas_src>
import numpy as np
import jax
import jax.numpy as jnp
from jax.experimental import pallas as pl
from jax.experimental.pallas import tpu as pltpu


def make_deeplog_kernel(num_layers: int, hidden_size: int, seq_len: int,
                        input_size: int):
    H = hidden_size
    T = seq_len
    I = input_size

    def kernel(*refs):
        # refs layout:
        #   x_ref (T, Bp, I)            f32 if I==1 else bf16,
        #   [wih_t (in,4H) (f32 if layer==0 and I==1 else bf16),
        #    whh_t (H,4H) bf16,
        #    bias  (1,4H) f32] * num_layers,     (g-gate cols pre-scaled by 2)
        #   fcw_t (H, NKp) bf16, fcb (1, NKp) f32,
        #   out_ref (Bp, NKp) f32,
        #   h_scratch (T, Bp, H) bf16   -- per-layer hidden-sequence buffer
        x_ref = refs[0]
        out_ref = refs[-2]
        h_scratch = refs[-1]
        param_refs = refs[1:-2]
        fcw_ref, fcb_ref = param_refs[-2], param_refs[-1]
        layer_refs = param_refs[:-2]

        B = x_ref.shape[1]

        h_bf = jnp.zeros((B, H), jnp.bfloat16)
        for layer in range(num_layers):
            wih_ref = layer_refs[3 * layer]
            whh_t = layer_refs[3 * layer + 1][...]   # (H, 4H) bf16
            bias = layer_refs[3 * layer + 2][...]    # (1, 4H) f32

            # Hoisted batched input projection (+ combined bias): off the
            # serial recurrence chain.
            if layer == 0 and I == 1:
                # Degenerate K=1 "matmul": do it as a fp32 VPU broadcast
                # multiply-add; x stays fp32, no MXU fill/drain.
                proj3d = x_ref[...] * wih_ref[...] + bias        # (T, B, 4H) f32
            else:
                if layer == 0:
                    inp2d = x_ref[...].reshape(T * B, I)          # (T*B, I)  bf16
                else:
                    inp2d = h_scratch[...].reshape(T * B, H)      # (T*B, H)  bf16
                proj3d = (jnp.dot(inp2d, wih_ref[...],
                                  preferred_element_type=jnp.float32)
                          + bias).reshape(T, B, 4 * H)            # (T, B, 4H) f32

            h_bf = jnp.zeros((B, H), jnp.bfloat16)
            c = jnp.zeros((B, H), jnp.float32)
            write_seq = layer < num_layers - 1   # last layer only needs h_T
            # T=8 is small: keep the loop fully unrolled.
            # TODO(synk): switch to lax.fori_loop(..., unroll=2) with an (h, c)
            # carry if seq_len grows beyond ~64 (vreg pressure / compile time).
            for t in range(T):
                # Only the recurrent (B,H)@(H,4H) matmul is on the serial chain;
                # bf16 operands, fp32 accumulation.
                gates = proj3d[t] + jnp.dot(
                    h_bf, whh_t, preferred_element_type=jnp.float32)   # (B,4H) f32
                # One full-width sigmoid + one tanh(c) per step (2 EUP pushes).
                sig = jax.nn.sigmoid(gates)
                i_g = sig[:, 0 * H:1 * H]
                f_g = sig[:, 1 * H:2 * H]
                o_g = sig[:, 3 * H:4 * H]
                # tanh(g) == 2*sigmoid(2g) - 1; the g-gate columns of the
                # weights/bias were pre-scaled by 2 in the wrapper.
                g_g = 2.0 * sig[:, 2 * H:3 * H] - 1.0
                c = f_g * c + i_g * g_g
                h_bf = (o_g * jnp.tanh(c)).astype(jnp.bfloat16)
                if write_seq:
                    # Every non-last layer writes all T slabs before the next
                    # layer reads the scratch -> no stale-VMEM reads.
                    h_scratch[t] = h_bf

        # Final Linear on the last timestep of the last layer (lane-padded).
        logits = (jnp.dot(h_bf, fcw_ref[...],
                          preferred_element_type=jnp.float32)
                  + fcb_ref[...])                                 # (Bp, NKp) f32
        out_ref[...] = logits.astype(out_ref.dtype)

    return kernel


def _scale_g_cols(m, H):
    """Multiply the g-gate columns [2H:3H) of a (..., 4H) array by 2 (exact),
    implementing tanh(g) = 2*sigmoid(2g) - 1 via pre-scaled weights."""
    scale = jnp.concatenate([jnp.ones((2 * H,), jnp.float32),
                             jnp.full((H,), 2.0, jnp.float32),
                             jnp.ones((H,), jnp.float32)])
    return m * scale


def init_deeplog_params(key, input_size, hidden_size, num_layers, num_keys):
    """Deterministic parameter init matching PyTorch shapes (uniform(-k, k), k=1/sqrt(H))."""
    H = hidden_size
    k = 1.0 / np.sqrt(H)
    params = []
    for layer in range(num_layers):
        in_size = input_size if layer == 0 else H
        key, k1, k2, k3, k4 = jax.random.split(key, 5)
        w_ih = jax.random.uniform(k1, (4 * H, in_size), jnp.float32, -k, k)
        w_hh = jax.random.uniform(k2, (4 * H, H), jnp.float32, -k, k)
        b_ih = jax.random.uniform(k3, (4 * H,), jnp.float32, -k, k)
        b_hh = jax.random.uniform(k4, (4 * H,), jnp.float32, -k, k)
        params.append((w_ih, w_hh, b_ih, b_hh))
    key, k5, k6 = jax.random.split(key, 3)
    kf = 1.0 / np.sqrt(H)
    fc_w = jax.random.uniform(k5, (num_keys, H), jnp.float32, -kf, kf)
    fc_b = jax.random.uniform(k6, (num_keys,), jnp.float32, -kf, kf)
    return params, (fc_w, fc_b)


def deeplog_forward(x, lstm_params, fc_params, hidden_size, num_layers, num_keys):
    B, T, I = x.shape
    H = hidden_size
    Bp = max(8, ((B + 7) // 8) * 8)            # sublane-aligned batch
    nk_pad = ((num_keys + 127) // 128) * 128   # lane-dense fc / output

    kernel = make_deeplog_kernel(num_layers, H, T, I)

    # Glue in plain JAX: zero-pad batch to Bp, time-major layout, pre-transposed
    # weights with g-gate pre-scaling, bf16 MXU operands (fp32 biases),
    # lane-padded fc.
    x_p = jnp.pad(x.astype(jnp.float32), ((0, Bp - B), (0, 0), (0, 0)))
    x_tb = jnp.transpose(x_p, (1, 0, 2))                               # (T, Bp, I)
    if I != 1:
        x_tb = x_tb.astype(jnp.bfloat16)

    kernel_args = [x_tb]
    for layer, (w_ih, w_hh, b_ih, b_hh) in enumerate(lstm_params):
        wih_t = _scale_g_cols(jnp.transpose(w_ih).astype(jnp.float32), H)  # (in, 4H)
        whh_t = _scale_g_cols(jnp.transpose(w_hh).astype(jnp.float32), H)  # (H, 4H)
        bias = _scale_g_cols((b_ih + b_hh).astype(jnp.float32), H).reshape(1, -1)
        if layer == 0 and I == 1:
            kernel_args.append(wih_t)                       # fp32 (VPU broadcast path)
        else:
            kernel_args.append(wih_t.astype(jnp.bfloat16))  # bf16 MXU operand
        kernel_args.append(whh_t.astype(jnp.bfloat16))
        kernel_args.append(bias)
    fc_w, fc_b = fc_params
    fcw_t = jnp.pad(jnp.transpose(fc_w).astype(jnp.bfloat16),
                    ((0, 0), (0, nk_pad - num_keys)))                  # (H, NKp)
    fcb_p = jnp.pad(fc_b.astype(jnp.float32),
                    (0, nk_pad - num_keys)).reshape(1, -1)             # (1, NKp)
    kernel_args += [fcw_t, fcb_p]

    vmem = pl.BlockSpec(memory_space=pltpu.MemorySpace.VMEM)
    out_padded = pl.pallas_call(
        kernel,
        out_shape=jax.ShapeDtypeStruct((Bp, nk_pad), jnp.float32),
        in_specs=[vmem] * len(kernel_args),
        out_specs=vmem,
        scratch_shapes=[pltpu.VMEM((T, Bp, H), jnp.bfloat16)],
    )(*kernel_args)
    return out_padded[:B, :num_keys]


def deeplog_reference(x, lstm_params, fc_params, hidden_size, num_layers):
    """Pure-JAX fp32 reference (same math as PyTorch nn.LSTM + Linear)."""
    H = hidden_size
    inp = x.astype(jnp.float32)
    h = None
    for layer in range(num_layers):
        w_ih, w_hh, b_ih, b_hh = lstm_params[layer]
        B, T, _ = inp.shape
        h = jnp.zeros((B, H), jnp.float32)
        c = jnp.zeros((B, H), jnp.float32)
        outs = []
        for t in range(T):
            g = inp[:, t, :] @ w_ih.T + h @ w_hh.T + b_ih + b_hh
            i_g = jax.nn.sigmoid(g[:, 0 * H:1 * H])
            f_g = jax.nn.sigmoid(g[:, 1 * H:2 * H])
            g_g = jnp.tanh(g[:, 2 * H:3 * H])
            o_g = jax.nn.sigmoid(g[:, 3 * H:4 * H])
            c = f_g * c + i_g * g_g
            h = o_g * jnp.tanh(c)
            outs.append(h)
        inp = jnp.stack(outs, axis=1)
    fc_w, fc_b = fc_params
    return h @ fc_w.T + fc_b


if __name__ == "__main__":
    # Small shapes consistent with the module's forward.
    batch = 2
    seq_len = 8
    input_size = 1
    hidden_size = 32
    num_layers = 2
    num_keys = 32

    key = jax.random.PRNGKey(0)
    key, xkey, pkey = jax.random.split(key, 3)
    x = jax.random.normal(xkey, (batch, seq_len, input_size), jnp.float32)

    lstm_params, fc_params = init_deeplog_params(
        pkey, input_size, hidden_size, num_layers, num_keys
    )

    out = deeplog_forward(x, lstm_params, fc_params, hidden_size, num_layers, num_keys)
    out = jax.block_until_ready(out)

    ref = deeplog_reference(x, lstm_params, fc_params, hidden_size, num_layers)
    assert out.shape == (batch, num_keys)
    # Kernel uses bf16 MXU operands / bf16 hidden states with fp32 accumulation
    # -> slightly looser tolerance than a pure-fp32 comparison.
    np.testing.assert_allclose(np.asarray(out), np.asarray(ref), rtol=2e-2, atol=2e-2)

    print("KERNEL_OK")
</pallas_src>

<mosaic_0001>
module attributes {stable_mosaic.version = 11 : i64} {
  func.func @kernel(%arg0: memref<8x8x1xf32, #tpu.memory_space<vmem>>, %arg1: memref<1x128xf32, #tpu.memory_space<vmem>>, %arg2: memref<32x128xbf16, #tpu.memory_space<vmem>>, %arg3: memref<1x128xf32, #tpu.memory_space<vmem>>, %arg4: memref<32x128xbf16, #tpu.memory_space<vmem>>, %arg5: memref<32x128xbf16, #tpu.memory_space<vmem>>, %arg6: memref<1x128xf32, #tpu.memory_space<vmem>>, %arg7: memref<32x128xbf16, #tpu.memory_space<vmem>>, %arg8: memref<1x128xf32, #tpu.memory_space<vmem>>, %arg9: memref<8x128xf32, #tpu.memory_space<vmem>>, %arg10: memref<8x8x32xbf16, #tpu.memory_space<vmem>>) attributes {dimension_semantics = [], scalar_prefetch = 0 : i64, scratch_operands = 1 : i64, tpu.core_type = #tpu.core_type<tc>} {
    %c0 = arith.constant 0 : index
    %c0_0 = arith.constant 0 : index
    %0 = vector.load %arg2[%c0, %c0_0] : memref<32x128xbf16, #tpu.memory_space<vmem>>, vector<32x128xbf16>
    %c0_1 = arith.constant 0 : index
    %c0_2 = arith.constant 0 : index
    %1 = vector.load %arg3[%c0_1, %c0_2] : memref<1x128xf32, #tpu.memory_space<vmem>>, vector<1x128xf32>
    %c0_3 = arith.constant 0 : index
    %c0_4 = arith.constant 0 : index
    %c0_5 = arith.constant 0 : index
    %2 = vector.load %arg0[%c0_3, %c0_4, %c0_5] : memref<8x8x1xf32, #tpu.memory_space<vmem>>, vector<8x8x1xf32>
    %c0_6 = arith.constant 0 : index
    %c0_7 = arith.constant 0 : index
    %3 = vector.load %arg1[%c0_6, %c0_7] : memref<1x128xf32, #tpu.memory_space<vmem>>, vector<1x128xf32>
    %4 = vector.shape_cast %3 : vector<1x128xf32> to vector<1x1x128xf32>
    %5 = vector.broadcast %2 : vector<8x8x1xf32> to vector<8x8x128xf32>
    %6 = vector.broadcast %4 : vector<1x1x128xf32> to vector<8x8x128xf32>
    %7 = arith.mulf %5, %6 : vector<8x8x128xf32>
    %8 = vector.shape_cast %1 : vector<1x128xf32> to vector<1x1x128xf32>
    %9 = vector.broadcast %8 : vector<1x1x128xf32> to vector<8x8x128xf32>
    %10 = arith.addf %7, %9 : vector<8x8x128xf32>
    %cst = arith.constant 0.000000e+00 : bf16
    %11 = vector.broadcast %cst : bf16 to vector<8x32xbf16>
    %cst_8 = arith.constant 0.000000e+00 : f32
    %12 = vector.broadcast %cst_8 : f32 to vector<8x32xf32>
    %13 = vector.extract_strided_slice %10 {offsets = [0, 0, 0], sizes = [1, 8, 128], strides = [1, 1, 1]} : vector<8x8x128xf32> to vector<1x8x128xf32>
    %14 = vector.shape_cast %13 : vector<1x8x128xf32> to vector<8x128xf32>
    %cst_9 = arith.constant dense<0.000000e+00> : vector<8x128xf32>
    %15 = tpu.matmul %11, %0, %cst_9 {dimension_numbers = #tpu.dot_dimension_numbers<[1], [0], [0], [1], [0, 0, 1, 1], [], []>} : vector<8x32xbf16>, vector<32x128xbf16>, vector<8x128xf32> -> vector<8x128xf32>
    %16 = arith.addf %14, %15 : vector<8x128xf32>
    %17 = arith.negf %16 : vector<8x128xf32>
    %18 = math.exp %17 : vector<8x128xf32>
    %cst_10 = arith.constant 1.000000e+00 : f32
    %19 = vector.broadcast %cst_10 : f32 to vector<8x128xf32>
    %20 = arith.addf %19, %18 : vector<8x128xf32>
    %21 = arith.divf %19, %20 : vector<8x128xf32>
    %22 = vector.extract_strided_slice %21 {offsets = [0, 0], sizes = [8, 32], strides = [1, 1]} : vector<8x128xf32> to vector<8x32xf32>
    %23 = vector.extract_strided_slice %21 {offsets = [0, 32], sizes = [8, 32], strides = [1, 1]} : vector<8x128xf32> to vector<8x32xf32>
    %24 = vector.extract_strided_slice %21 {offsets = [0, 96], sizes = [8, 32], strides = [1, 1]} : vector<8x128xf32> to vector<8x32xf32>
    %25 = vector.extract_strided_slice %21 {offsets = [0, 64], sizes = [8, 32], strides = [1, 1]} : vector<8x128xf32> to vector<8x32xf32>
    %cst_11 = arith.constant 2.000000e+00 : f32
    %26 = vector.broadcast %cst_11 : f32 to vector<8x32xf32>
    %27 = arith.mulf %26, %25 : vector<8x32xf32>
    %cst_12 = arith.constant 1.000000e+00 : f32
    %28 = vector.broadcast %cst_12 : f32 to vector<8x32xf32>
    %29 = arith.subf %27, %28 : vector<8x32xf32>
    %30 = arith.mulf %23, %12 : vector<8x32xf32>
    %31 = arith.mulf %22, %29 : vector<8x32xf32>
    %32 = arith.addf %30, %31 : vector<8x32xf32>
    %33 = math.tanh %32 : vector<8x32xf32>
    %34 = arith.mulf %24, %33 : vector<8x32xf32>
    %35 = arith.truncf %34 : vector<8x32xf32> to vector<8x32xbf16>
    %c0_13 = arith.constant 0 : index
    %c0_14 = arith.constant 0 : index
    %c0_15 = arith.constant 0 : index
    %36 = vector.load %arg10[%c0_13, %c0_14, %c0_15] : memref<8x8x32xbf16, #tpu.memory_space<vmem>>, vector<1x8x32xbf16>
    %37 = vector.shape_cast %36 : vector<1x8x32xbf16> to vector<8x32xbf16>
    %38 = vector.shape_cast %35 : vector<8x32xbf16> to vector<1x8x32xbf16>
    tpu.vector_store %arg10[%c0_13, %c0_14, %c0_15], %38 {strides = array<i32>} : memref<8x8x32xbf16, #tpu.memory_space<vmem>>, vector<1x8x32xbf16>,
    %39 = vector.extract_strided_slice %10 {offsets = [1, 0, 0], sizes = [1, 8, 128], strides = [1, 1, 1]} : vector<8x8x128xf32> to vector<1x8x128xf32>
    %40 = vector.shape_cast %39 : vector<1x8x128xf32> to vector<8x128xf32>
    %cst_16 = arith.constant dense<0.000000e+00> : vector<8x128xf32>
    %41 = tpu.matmul %35, %0, %cst_16 {dimension_numbers = #tpu.dot_dimension_numbers<[1], [0], [0], [1], [0, 0, 1, 1], [], []>} : vector<8x32xbf16>, vector<32x128xbf16>, vector<8x128xf32> -> vector<8x128xf32>
    %42 = arith.addf %40, %41 : vector<8x128xf32>
    %43 = arith.negf %42 : vector<8x128xf32>
    %44 = math.exp %43 : vector<8x128xf32>
    %cst_17 = arith.constant 1.000000e+00 : f32
    %45 = vector.broadcast %cst_17 : f32 to vector<8x128xf32>
    %46 = arith.addf %45, %44 : vector<8x128xf32>
    %47 = arith.divf %45, %46 : vector<8x128xf32>
    %48 = vector.extract_strided_slice %47 {offsets = [0, 0], sizes = [8, 32], strides = [1, 1]} : vector<8x128xf32> to vector<8x32xf32>
    %49 = vector.extract_strided_slice %47 {offsets = [0, 32], sizes = [8, 32], strides = [1, 1]} : vector<8x128xf32> to vector<8x32xf32>
    %50 = vector.extract_strided_slice %47 {offsets = [0, 96], sizes = [8, 32], strides = [1, 1]} : vector<8x128xf32> to vector<8x32xf32>
    %51 = vector.extract_strided_slice %47 {offsets = [0, 64], sizes = [8, 32], strides = [1, 1]} : vector<8x128xf32> to vector<8x32xf32>
    %cst_18 = arith.constant 2.000000e+00 : f32
    %52 = vector.broadcast %cst_18 : f32 to vector<8x32xf32>
    %53 = arith.mulf %52, %51 : vector<8x32xf32>
    %cst_19 = arith.constant 1.000000e+00 : f32
    %54 = vector.broadcast %cst_19 : f32 to vector<8x32xf32>
    %55 = arith.subf %53, %54 : vector<8x32xf32>
    %56 = arith.mulf %49, %32 : vector<8x32xf32>
    %57 = arith.mulf %48, %55 : vector<8x32xf32>
    %58 = arith.addf %56, %57 : vector<8x32xf32>
    %59 = math.tanh %58 : vector<8x32xf32>
    %60 = arith.mulf %50, %59 : vector<8x32xf32>
    %61 = arith.truncf %60 : vector<8x32xf32> to vector<8x32xbf16>
    %c1 = arith.constant 1 : index
    %c0_20 = arith.constant 0 : index
    %c0_21 = arith.constant 0 : index
    %62 = vector.load %arg10[%c1, %c0_20, %c0_21] : memref<8x8x32xbf16, #tpu.memory_space<vmem>>, vector<1x8x32xbf16>
    %63 = vector.shape_cast %62 : vector<1x8x32xbf16> to vector<8x32xbf16>
    %64 = vector.shape_cast %61 : vector<8x32xbf16> to vector<1x8x32xbf16>
    tpu.vector_store %arg10[%c1, %c0_20, %c0_21], %64 {strides = array<i32>} : memref<8x8x32xbf16, #tpu.memory_space<vmem>>, vector<1x8x32xbf16>,
    %65 = vector.extract_strided_slice %10 {offsets = [2, 0, 0], sizes = [1, 8, 128], strides = [1, 1, 1]} : vector<8x8x128xf32> to vector<1x8x128xf32>
    %66 = vector.shape_cast %65 : vector<1x8x128xf32> to vector<8x128xf32>
    %cst_22 = arith.constant dense<0.000000e+00> : vector<8x128xf32>
    %67 = tpu.matmul %61, %0, %cst_22 {dimension_numbers = #tpu.dot_dimension_numbers<[1], [0], [0], [1], [0, 0, 1, 1], [], []>} : vector<8x32xbf16>, vector<32x128xbf16>, vector<8x128xf32> -> vector<8x128xf32>
    %68 = arith.addf %66, %67 : vector<8x128xf32>
    %69 = arith.negf %68 : vector<8x128xf32>
    %70 = math.exp %69 : vector<8x128xf32>
    %cst_23 = arith.constant 1.000000e+00 : f32
    %71 = vector.broadcast %cst_23 : f32 to vector<8x128xf32>
    %72 = arith.addf %71, %70 : vector<8x128xf32>
    %73 = arith.divf %71, %72 : vector<8x128xf32>
    %74 = vector.extract_strided_slice %73 {offsets = [0, 0], sizes = [8, 32], strides = [1, 1]} : vector<8x128xf32> to vector<8x32xf32>
    %75 = vector.extract_strided_slice %73 {offsets = [0, 32], sizes = [8, 32], strides = [1, 1]} : vector<8x128xf32> to vector<8x32xf32>
    %76 = vector.extract_strided_slice %73 {offsets = [0, 96], sizes = [8, 32], strides = [1, 1]} : vector<8x128xf32> to vector<8x32xf32>
    %77 = vector.extract_strided_slice %73 {offsets = [0, 64], sizes = [8, 32], strides = [1, 1]} : vector<8x128xf32> to vector<8x32xf32>
    %cst_24 = arith.constant 2.000000e+00 : f32
    %78 = vector.broadcast %cst_24 : f32 to vector<8x32xf32>
    %79 = arith.mulf %78, %77 : vector<8x32xf32>
    %cst_25 = arith.constant 1.000000e+00 : f32
    %80 = vector.broadcast %cst_25 : f32 to vector<8x32xf32>
    %81 = arith.subf %79, %80 : vector<8x32xf32>
    %82 = arith.mulf %75, %58 : vector<8x32xf32>
    %83 = arith.mulf %74, %81 : vector<8x32xf32>
    %84 = arith.addf %82, %83 : vector<8x32xf32>
    %85 = math.tanh %84 : vector<8x32xf32>
    %86 = arith.mulf %76, %85 : vector<8x32xf32>
    %87 = arith.truncf %86 : vector<8x32xf32> to vector<8x32xbf16>
    %c2 = arith.constant 2 : index
    %c0_26 = arith.constant 0 : index
    %c0_27 = arith.constant 0 : index
    %88 = vector.load %arg10[%c2, %c0_26, %c0_27] : memref<8x8x32xbf16, #tpu.memory_space<vmem>>, vector<1x8x32xbf16>
    %89 = vector.shape_cast %88 : vector<1x8x32xbf16> to vector<8x32xbf16>
    %90 = vector.shape_cast %87 : vector<8x32xbf16> to vector<1x8x32xbf16>
    tpu.vector_store %arg10[%c2, %c0_26, %c0_27], %90 {strides = array<i32>} : memref<8x8x32xbf16, #tpu.memory_space<vmem>>, vector<1x8x32xbf16>,
    %91 = vector.extract_strided_slice %10 {offsets = [3, 0, 0], sizes = [1, 8, 128], strides = [1, 1, 1]} : vector<8x8x128xf32> to vector<1x8x128xf32>
    %92 = vector.shape_cast %91 : vector<1x8x128xf32> to vector<8x128xf32>
    %cst_28 = arith.constant dense<0.000000e+00> : vector<8x128xf32>
    %93 = tpu.matmul %87, %0, %cst_28 {dimension_numbers = #tpu.dot_dimension_numbers<[1], [0], [0], [1], [0, 0, 1, 1], [], []>} : vector<8x32xbf16>, vector<32x128xbf16>, vector<8x128xf32> -> vector<8x128xf32>
    %94 = arith.addf %92, %93 : vector<8x128xf32>
    %95 = arith.negf %94 : vector<8x128xf32>
    %96 = math.exp %95 : vector<8x128xf32>
    %cst_29 = arith.constant 1.000000e+00 : f32
    %97 = vector.broadcast %cst_29 : f32 to vector<8x128xf32>
    %98 = arith.addf %97, %96 : vector<8x128xf32>
    %99 = arith.divf %97, %98 : vector<8x128xf32>
    %100 = vector.extract_strided_slice %99 {offsets = [0, 0], sizes = [8, 32], strides = [1, 1]} : vector<8x128xf32> to vector<8x32xf32>
    %101 = vector.extract_strided_slice %99 {offsets = [0, 32], sizes = [8, 32], strides = [1, 1]} : vector<8x128xf32> to vector<8x32xf32>
    %102 = vector.extract_strided_slice %99 {offsets = [0, 96], sizes = [8, 32], strides = [1, 1]} : vector<8x128xf32> to vector<8x32xf32>
    %103 = vector.extract_strided_slice %99 {offsets = [0, 64], sizes = [8, 32], strides = [1, 1]} : vector<8x128xf32> to vector<8x32xf32>
    %cst_30 = arith.constant 2.000000e+00 : f32
    %104 = vector.broadcast %cst_30 : f32 to vector<8x32xf32>
    %105 = arith.mulf %104, %103 : vector<8x32xf32>
    %cst_31 = arith.constant 1.000000e+00 : f32
    %106 = vector.broadcast %cst_31 : f32 to vector<8x32xf32>
    %107 = arith.subf %105, %106 : vector<8x32xf32>
    %108 = arith.mulf %101, %84 : vector<8x32xf32>
    %109 = arith.mulf %100, %107 : vector<8x32xf32>
    %110 = arith.addf %108, %109 : vector<8x32xf32>
    %111 = math.tanh %110 : vector<8x32xf32>
    %112 = arith.mulf %102, %111 : vector<8x32xf32>
    %113 = arith.truncf %112 : vector<8x32xf32> to vector<8x32xbf16>
    %c3 = arith.constant 3 : index
    %c0_32 = arith.constant 0 : index
    %c0_33 = arith.constant 0 : index
    %114 = vector.load %arg10[%c3, %c0_32, %c0_33] : memref<8x8x32xbf16, #tpu.memory_space<vmem>>, vector<1x8x32xbf16>
    %115 = vector.shape_cast %114 : vector<1x8x32xbf16> to vector<8x32xbf16>
    %116 = vector.shape_cast %113 : vector<8x32xbf16> to vector<1x8x32xbf16>
    tpu.vector_store %arg10[%c3, %c0_32, %c0_33], %116 {strides = array<i32>} : memref<8x8x32xbf16, #tpu.memory_space<vmem>>, vector<1x8x32xbf16>,
    %117 = vector.extract_strided_slice %10 {offsets = [4, 0, 0], sizes = [1, 8, 128], strides = [1, 1, 1]} : vector<8x8x128xf32> to vector<1x8x128xf32>
    %118 = vector.shape_cast %117 : vector<1x8x128xf32> to vector<8x128xf32>
    %cst_34 = arith.constant dense<0.000000e+00> : vector<8x128xf32>
    %119 = tpu.matmul %113, %0, %cst_34 {dimension_numbers = #tpu.dot_dimension_numbers<[1], [0], [0], [1], [0, 0, 1, 1], [], []>} : vector<8x32xbf16>, vector<32x128xbf16>, vector<8x128xf32> -> vector<8x128xf32>
    %120 = arith.addf %118, %119 : vector<8x128xf32>
    %121 = arith.negf %120 : vector<8x128xf32>
    %122 = math.exp %121 : vector<8x128xf32>
    %cst_35 = arith.constant 1.000000e+00 : f32
    %123 = vector.broadcast %cst_35 : f32 to vector<8x128xf32>
    %124 = arith.addf %123, %122 : vector<8x128xf32>
    %125 = arith.divf %123, %124 : vector<8x128xf32>
    %126 = vector.extract_strided_slice %125 {offsets = [0, 0], sizes = [8, 32], strides = [1, 1]} : vector<8x128xf32> to vector<8x32xf32>
    %127 = vector.extract_strided_slice %125 {offsets = [0, 32], sizes = [8, 32], strides = [1, 1]} : vector<8x128xf32> to vector<8x32xf32>
    %128 = vector.extract_strided_slice %125 {offsets = [0, 96], sizes = [8, 32], strides = [1, 1]} : vector<8x128xf32> to vector<8x32xf32>
    %129 = vector.extract_strided_slice %125 {offsets = [0, 64], sizes = [8, 32], strides = [1, 1]} : vector<8x128xf32> to vector<8x32xf32>
    %cst_36 = arith.constant 2.000000e+00 : f32
    %130 = vector.broadcast %cst_36 : f32 to vector<8x32xf32>
    %131 = arith.mulf %130, %129 : vector<8x32xf32>
    %cst_37 = arith.constant 1.000000e+00 : f32
    %132 = vector.broadcast %cst_37 : f32 to vector<8x32xf32>
    %133 = arith.subf %131, %132 : vector<8x32xf32>
    %134 = arith.mulf %127, %110 : vector<8x32xf32>
    %135 = arith.mulf %126, %133 : vector<8x32xf32>
    %136 = arith.addf %134, %135 : vector<8x32xf32>
    %137 = math.tanh %136 : vector<8x32xf32>
    %138 = arith.mulf %128, %137 : vector<8x32xf32>
    %139 = arith.truncf %138 : vector<8x32xf32> to vector<8x32xbf16>
    %c4 = arith.constant 4 : index
    %c0_38 = arith.constant 0 : index
    %c0_39 = arith.constant 0 : index
    %140 = vector.load %arg10[%c4, %c0_38, %c0_39] : memref<8x8x32xbf16, #tpu.memory_space<vmem>>, vector<1x8x32xbf16>
    %141 = vector.shape_cast %140 : vector<1x8x32xbf16> to vector<8x32xbf16>
    %142 = vector.shape_cast %139 : vector<8x32xbf16> to vector<1x8x32xbf16>
    tpu.vector_store %arg10[%c4, %c0_38, %c0_39], %142 {strides = array<i32>} : memref<8x8x32xbf16, #tpu.memory_space<vmem>>, vector<1x8x32xbf16>,
    %143 = vector.extract_strided_slice %10 {offsets = [5, 0, 0], sizes = [1, 8, 128], strides = [1, 1, 1]} : vector<8x8x128xf32> to vector<1x8x128xf32>
    %144 = vector.shape_cast %143 : vector<1x8x128xf32> to vector<8x128xf32>
    %cst_40 = arith.constant dense<0.000000e+00> : vector<8x128xf32>
    %145 = tpu.matmul %139, %0, %cst_40 {dimension_numbers = #tpu.dot_dimension_numbers<[1], [0], [0], [1], [0, 0, 1, 1], [], []>} : vector<8x32xbf16>, vector<32x128xbf16>, vector<8x128xf32> -> vector<8x128xf32>
    %146 = arith.addf %144, %145 : vector<8x128xf32>
    %147 = arith.negf %146 : vector<8x128xf32>
    %148 = math.exp %147 : vector<8x128xf32>
    %cst_41 = arith.constant 1.000000e+00 : f32
    %149 = vector.broadcast %cst_41 : f32 to vector<8x128xf32>
    %150 = arith.addf %149, %148 : vector<8x128xf32>
    %151 = arith.divf %149, %150 : vector<8x128xf32>
    %152 = vector.extract_strided_slice %151 {offsets = [0, 0], sizes = [8, 32], strides = [1, 1]} : vector<8x128xf32> to vector<8x32xf32>
    %153 = vector.extract_strided_slice %151 {offsets = [0, 32], sizes = [8, 32], strides = [1, 1]} : vector<8x128xf32> to vector<8x32xf32>
    %154 = vector.extract_strided_slice %151 {offsets = [0, 96], sizes = [8, 32], strides = [1, 1]} : vector<8x128xf32> to vector<8x32xf32>
    %155 = vector.extract_strided_slice %151 {offsets = [0, 64], sizes = [8, 32], strides = [1, 1]} : vector<8x128xf32> to vector<8x32xf32>
    %cst_42 = arith.constant 2.000000e+00 : f32
    %156 = vector.broadcast %cst_42 : f32 to vector<8x32xf32>
    %157 = arith.mulf %156, %155 : vector<8x32xf32>
    %cst_43 = arith.constant 1.000000e+00 : f32
    %158 = vector.broadcast %cst_43 : f32 to vector<8x32xf32>
    %159 = arith.subf %157, %158 : vector<8x32xf32>
    %160 = arith.mulf %153, %136 : vector<8x32xf32>
    %161 = arith.mulf %152, %159 : vector<8x32xf32>
    %162 = arith.addf %160, %161 : vector<8x32xf32>
    %163 = math.tanh %162 : vector<8x32xf32>
    %164 = arith.mulf %154, %163 : vector<8x32xf32>
    %165 = arith.truncf %164 : vector<8x32xf32> to vector<8x32xbf16>
    %c5 = arith.constant 5 : index
    %c0_44 = arith.constant 0 : index
    %c0_45 = arith.constant 0 : index
    %166 = vector.load %arg10[%c5, %c0_44, %c0_45] : memref<8x8x32xbf16, #tpu.memory_space<vmem>>, vector<1x8x32xbf16>
    %167 = vector.shape_cast %166 : vector<1x8x32xbf16> to vector<8x32xbf16>
    %168 = vector.shape_cast %165 : vector<8x32xbf16> to vector<1x8x32xbf16>
    tpu.vector_store %arg10[%c5, %c0_44, %c0_45], %168 {strides = array<i32>} : memref<8x8x32xbf16, #tpu.memory_space<vmem>>, vector<1x8x32xbf16>,
    %169 = vector.extract_strided_slice %10 {offsets = [6, 0, 0], sizes = [1, 8, 128], strides = [1, 1, 1]} : vector<8x8x128xf32> to vector<1x8x128xf32>
    %170 = vector.shape_cast %169 : vector<1x8x128xf32> to vector<8x128xf32>
    %cst_46 = arith.constant dense<0.000000e+00> : vector<8x128xf32>
    %171 = tpu.matmul %165, %0, %cst_46 {dimension_numbers = #tpu.dot_dimension_numbers<[1], [0], [0], [1], [0, 0, 1, 1], [], []>} : vector<8x32xbf16>, vector<32x128xbf16>, vector<8x128xf32> -> vector<8x128xf32>
    %172 = arith.addf %170, %171 : vector<8x128xf32>
    %173 = arith.negf %172 : vector<8x128xf32>
    %174 = math.exp %173 : vector<8x128xf32>
    %cst_47 = arith.constant 1.000000e+00 : f32
    %175 = vector.broadcast %cst_47 : f32 to vector<8x128xf32>
    %176 = arith.addf %175, %174 : vector<8x128xf32>
    %177 = arith.divf %175, %176 : vector<8x128xf32>
    %178 = vector.extract_strided_slice %177 {offsets = [0, 0], sizes = [8, 32], strides = [1, 1]} : vector<8x128xf32> to vector<8x32xf32>
    %179 = vector.extract_strided_slice %177 {offsets = [0, 32], sizes = [8, 32], strides = [1, 1]} : vector<8x128xf32> to vector<8x32xf32>
    %180 = vector.extract_strided_slice %177 {offsets = [0, 96], sizes = [8, 32], strides = [1, 1]} : vector<8x128xf32> to vector<8x32xf32>
    %181 = vector.extract_strided_slice %177 {offsets = [0, 64], sizes = [8, 32], strides = [1, 1]} : vector<8x128xf32> to vector<8x32xf32>
    %cst_48 = arith.constant 2.000000e+00 : f32
    %182 = vector.broadcast %cst_48 : f32 to vector<8x32xf32>
    %183 = arith.mulf %182, %181 : vector<8x32xf32>
    %cst_49 = arith.constant 1.000000e+00 : f32
    %184 = vector.broadcast %cst_49 : f32 to vector<8x32xf32>
    %185 = arith.subf %183, %184 : vector<8x32xf32>
    %186 = arith.mulf %179, %162 : vector<8x32xf32>
    %187 = arith.mulf %178, %185 : vector<8x32xf32>
    %188 = arith.addf %186, %187 : vector<8x32xf32>
    %189 = math.tanh %188 : vector<8x32xf32>
    %190 = arith.mulf %180, %189 : vector<8x32xf32>
    %191 = arith.truncf %190 : vector<8x32xf32> to vector<8x32xbf16>
    %c6 = arith.constant 6 : index
    %c0_50 = arith.constant 0 : index
    %c0_51 = arith.constant 0 : index
    %192 = vector.load %arg10[%c6, %c0_50, %c0_51] : memref<8x8x32xbf16, #tpu.memory_space<vmem>>, vector<1x8x32xbf16>
    %193 = vector.shape_cast %192 : vector<1x8x32xbf16> to vector<8x32xbf16>
    %194 = vector.shape_cast %191 : vector<8x32xbf16> to vector<1x8x32xbf16>
    tpu.vector_store %arg10[%c6, %c0_50, %c0_51], %194 {strides = array<i32>} : memref<8x8x32xbf16, #tpu.memory_space<vmem>>, vector<1x8x32xbf16>,
    %195 = vector.extract_strided_slice %10 {offsets = [7, 0, 0], sizes = [1, 8, 128], strides = [1, 1, 1]} : vector<8x8x128xf32> to vector<1x8x128xf32>
    %196 = vector.shape_cast %195 : vector<1x8x128xf32> to vector<8x128xf32>
    %cst_52 = arith.constant dense<0.000000e+00> : vector<8x128xf32>
    %197 = tpu.matmul %191, %0, %cst_52 {dimension_numbers = #tpu.dot_dimension_numbers<[1], [0], [0], [1], [0, 0, 1, 1], [], []>} : vector<8x32xbf16>, vector<32x128xbf16>, vector<8x128xf32> -> vector<8x128xf32>
    %198 = arith.addf %196, %197 : vector<8x128xf32>
    %199 = arith.negf %198 : vector<8x128xf32>
    %200 = math.exp %199 : vector<8x128xf32>
    %cst_53 = arith.constant 1.000000e+00 : f32
    %201 = vector.broadcast %cst_53 : f32 to vector<8x128xf32>
    %202 = arith.addf %201, %200 : vector<8x128xf32>
    %203 = arith.divf %201, %202 : vector<8x128xf32>
    %204 = vector.extract_strided_slice %203 {offsets = [0, 0], sizes = [8, 32], strides = [1, 1]} : vector<8x128xf32> to vector<8x32xf32>
    %205 = vector.extract_strided_slice %203 {offsets = [0, 32], sizes = [8, 32], strides = [1, 1]} : vector<8x128xf32> to vector<8x32xf32>
    %206 = vector.extract_strided_slice %203 {offsets = [0, 96], sizes = [8, 32], strides = [1, 1]} : vector<8x128xf32> to vector<8x32xf32>
    %207 = vector.extract_strided_slice %203 {offsets = [0, 64], sizes = [8, 32], strides = [1, 1]} : vector<8x128xf32> to vector<8x32xf32>
    %cst_54 = arith.constant 2.000000e+00 : f32
    %208 = vector.broadcast %cst_54 : f32 to vector<8x32xf32>
    %209 = arith.mulf %208, %207 : vector<8x32xf32>
    %cst_55 = arith.constant 1.000000e+00 : f32
    %210 = vector.broadcast %cst_55 : f32 to vector<8x32xf32>
    %211 = arith.subf %209, %210 : vector<8x32xf32>
    %212 = arith.mulf %205, %188 : vector<8x32xf32>
    %213 = arith.mulf %204, %211 : vector<8x32xf32>
    %214 = arith.addf %212, %213 : vector<8x32xf32>
    %215 = math.tanh %214 : vector<8x32xf32>
    %216 = arith.mulf %206, %215 : vector<8x32xf32>
    %217 = arith.truncf %216 : vector<8x32xf32> to vector<8x32xbf16>
    %c7 = arith.constant 7 : index
    %c0_56 = arith.constant 0 : index
    %c0_57 = arith.constant 0 : index
    %218 = vector.load %arg10[%c7, %c0_56, %c0_57] : memref<8x8x32xbf16, #tpu.memory_space<vmem>>, vector<1x8x32xbf16>
    %219 = vector.shape_cast %218 : vector<1x8x32xbf16> to vector<8x32xbf16>
    %220 = vector.shape_cast %217 : vector<8x32xbf16> to vector<1x8x32xbf16>
    tpu.vector_store %arg10[%c7, %c0_56, %c0_57], %220 {strides = array<i32>} : memref<8x8x32xbf16, #tpu.memory_space<vmem>>, vector<1x8x32xbf16>,
    %c0_58 = arith.constant 0 : index
    %c0_59 = arith.constant 0 : index
    %221 = vector.load %arg5[%c0_58, %c0_59] : memref<32x128xbf16, #tpu.memory_space<vmem>>, vector<32x128xbf16>
    %c0_60 = arith.constant 0 : index
    %c0_61 = arith.constant 0 : index
    %222 = vector.load %arg6[%c0_60, %c0_61] : memref<1x128xf32, #tpu.memory_space<vmem>>, vector<1x128xf32>
    %c0_62 = arith.constant 0 : index
    %c0_63 = arith.constant 0 : index
    %c0_64 = arith.constant 0 : index
    %223 = vector.load %arg10[%c0_62, %c0_63, %c0_64] : memref<8x8x32xbf16, #tpu.memory_space<vmem>>, vector<8x8x32xbf16>
    %224 = vector.shape_cast %223 : vector<8x8x32xbf16> to vector<64x32xbf16>
    %c0_65 = arith.constant 0 : index
    %c0_66 = arith.constant 0 : index
    %225 = vector.load %arg4[%c0_65, %c0_66] : memref<32x128xbf16, #tpu.memory_space<vmem>>, vector<32x128xbf16>
    %cst_67 = arith.constant dense<0.000000e+00> : vector<64x128xf32>
    %226 = tpu.matmul %224, %225, %cst_67 {dimension_numbers = #tpu.dot_dimension_numbers<[1], [0], [0], [1], [0, 0, 1, 1], [], []>} : vector<64x32xbf16>, vector<32x128xbf16>, vector<64x128xf32> -> vector<64x128xf32>
    %227 = vector.broadcast %222 : vector<1x128xf32> to vector<64x128xf32>
    %228 = arith.addf %226, %227 : vector<64x128xf32>
    %229 = vector.shape_cast %228 : vector<64x128xf32> to vector<8x8x128xf32>
    %cst_68 = arith.constant 0.000000e+00 : bf16
    %230 = vector.broadcast %cst_68 : bf16 to vector<8x32xbf16>
    %cst_69 = arith.constant 0.000000e+00 : f32
    %231 = vector.broadcast %cst_69 : f32 to vector<8x32xf32>
    %232 = vector.extract_strided_slice %229 {offsets = [0, 0, 0], sizes = [1, 8, 128], strides = [1, 1, 1]} : vector<8x8x128xf32> to vector<1x8x128xf32>
    %233 = vector.shape_cast %232 : vector<1x8x128xf32> to vector<8x128xf32>
    %cst_70 = arith.constant dense<0.000000e+00> : vector<8x128xf32>
    %234 = tpu.matmul %230, %221, %cst_70 {dimension_numbers = #tpu.dot_dimension_numbers<[1], [0], [0], [1], [0, 0, 1, 1], [], []>} : vector<8x32xbf16>, vector<32x128xbf16>, vector<8x128xf32> -> vector<8x128xf32>
    %235 = arith.addf %233, %234 : vector<8x128xf32>
    %236 = arith.negf %235 : vector<8x128xf32>
    %237 = math.exp %236 : vector<8x128xf32>
    %cst_71 = arith.constant 1.000000e+00 : f32
    %238 = vector.broadcast %cst_71 : f32 to vector<8x128xf32>
    %239 = arith.addf %238, %237 : vector<8x128xf32>
    %240 = arith.divf %238, %239 : vector<8x128xf32>
    %241 = vector.extract_strided_slice %240 {offsets = [0, 0], sizes = [8, 32], strides = [1, 1]} : vector<8x128xf32> to vector<8x32xf32>
    %242 = vector.extract_strided_slice %240 {offsets = [0, 32], sizes = [8, 32], strides = [1, 1]} : vector<8x128xf32> to vector<8x32xf32>
    %243 = vector.extract_strided_slice %240 {offsets = [0, 96], sizes = [8, 32], strides = [1, 1]} : vector<8x128xf32> to vector<8x32xf32>
    %244 = vector.extract_strided_slice %240 {offsets = [0, 64], sizes = [8, 32], strides = [1, 1]} : vector<8x128xf32> to vector<8x32xf32>
    %cst_72 = arith.constant 2.000000e+00 : f32
    %245 = vector.broadcast %cst_72 : f32 to vector<8x32xf32>
    %246 = arith.mulf %245, %244 : vector<8x32xf32>
    %cst_73 = arith.constant 1.000000e+00 : f32
    %247 = vector.broadcast %cst_73 : f32 to vector<8x32xf32>
    %248 = arith.subf %246, %247 : vector<8x32xf32>
    %249 = arith.mulf %242, %231 : vector<8x32xf32>
    %250 = arith.mulf %241, %248 : vector<8x32xf32>
    %251 = arith.addf %249, %250 : vector<8x32xf32>
    %252 = math.tanh %251 : vector<8x32xf32>
    %253 = arith.mulf %243, %252 : vector<8x32xf32>
    %254 = arith.truncf %253 : vector<8x32xf32> to vector<8x32xbf16>
    %255 = vector.extract_strided_slice %229 {offsets = [1, 0, 0], sizes = [1, 8, 128], strides = [1, 1, 1]} : vector<8x8x128xf32> to vector<1x8x128xf32>
    %256 = vector.shape_cast %255 : vector<1x8x128xf32> to vector<8x128xf32>
    %cst_74 = arith.constant dense<0.000000e+00> : vector<8x128xf32>
    %257 = tpu.matmul %254, %221, %cst_74 {dimension_numbers = #tpu.dot_dimension_numbers<[1], [0], [0], [1], [0, 0, 1, 1], [], []>} : vector<8x32xbf16>, vector<32x128xbf16>, vector<8x128xf32> -> vector<8x128xf32>
    %258 = arith.addf %256, %257 : vector<8x128xf32>
    %259 = arith.negf %258 : vector<8x128xf32>
    %260 = math.exp %259 : vector<8x128xf32>
    %cst_75 = arith.constant 1.000000e+00 : f32
    %261 = vector.broadcast %cst_75 : f32 to vector<8x128xf32>
    %262 = arith.addf %261, %260 : vector<8x128xf32>
    %263 = arith.divf %261, %262 : vector<8x128xf32>
    %264 = vector.extract_strided_slice %263 {offsets = [0, 0], sizes = [8, 32], strides = [1, 1]} : vector<8x128xf32> to vector<8x32xf32>
    %265 = vector.extract_strided_slice %263 {offsets = [0, 32], sizes = [8, 32], strides = [1, 1]} : vector<8x128xf32> to vector<8x32xf32>
    %266 = vector.extract_strided_slice %263 {offsets = [0, 96], sizes = [8, 32], strides = [1, 1]} : vector<8x128xf32> to vector<8x32xf32>
    %267 = vector.extract_strided_slice %263 {offsets = [0, 64], sizes = [8, 32], strides = [1, 1]} : vector<8x128xf32> to vector<8x32xf32>
    %cst_76 = arith.constant 2.000000e+00 : f32
    %268 = vector.broadcast %cst_76 : f32 to vector<8x32xf32>
    %269 = arith.mulf %268, %267 : vector<8x32xf32>
    %cst_77 = arith.constant 1.000000e+00 : f32
    %270 = vector.broadcast %cst_77 : f32 to vector<8x32xf32>
    %271 = arith.subf %269, %270 : vector<8x32xf32>
    %272 = arith.mulf %265, %251 : vector<8x32xf32>
    %273 = arith.mulf %264, %271 : vector<8x32xf32>
    %274 = arith.addf %272, %273 : vector<8x32xf32>
    %275 = math.tanh %274 : vector<8x32xf32>
    %276 = arith.mulf %266, %275 : vector<8x32xf32>
    %277 = arith.truncf %276 : vector<8x32xf32> to vector<8x32xbf16>
    %278 = vector.extract_strided_slice %229 {offsets = [2, 0, 0], sizes = [1, 8, 128], strides = [1, 1, 1]} : vector<8x8x128xf32> to vector<1x8x128xf32>
    %279 = vector.shape_cast %278 : vector<1x8x128xf32> to vector<8x128xf32>
    %cst_78 = arith.constant dense<0.000000e+00> : vector<8x128xf32>
    %280 = tpu.matmul %277, %221, %cst_78 {dimension_numbers = #tpu.dot_dimension_numbers<[1], [0], [0], [1], [0, 0, 1, 1], [], []>} : vector<8x32xbf16>, vector<32x128xbf16>, vector<8x128xf32> -> vector<8x128xf32>
    %281 = arith.addf %279, %280 : vector<8x128xf32>
    %282 = arith.negf %281 : vector<8x128xf32>
    %283 = math.exp %282 : vector<8x128xf32>
    %cst_79 = arith.constant 1.000000e+00 : f32
    %284 = vector.broadcast %cst_79 : f32 to vector<8x128xf32>
    %285 = arith.addf %284, %283 : vector<8x128xf32>
    %286 = arith.divf %284, %285 : vector<8x128xf32>
    %287 = vector.extract_strided_slice %286 {offsets = [0, 0], sizes = [8, 32], strides = [1, 1]} : vector<8x128xf32> to vector<8x32xf32>
    %288 = vector.extract_strided_slice %286 {offsets = [0, 32], sizes = [8, 32], strides = [1, 1]} : vector<8x128xf32> to vector<8x32xf32>
    %289 = vector.extract_strided_slice %286 {offsets = [0, 96], sizes = [8, 32], strides = [1, 1]} : vector<8x128xf32> to vector<8x32xf32>
    %290 = vector.extract_strided_slice %286 {offsets = [0, 64], sizes = [8, 32], strides = [1, 1]} : vector<8x128xf32> to vector<8x32xf32>
    %cst_80 = arith.constant 2.000000e+00 : f32
    %291 = vector.broadcast %cst_80 : f32 to vector<8x32xf32>
    %292 = arith.mulf %291, %290 : vector<8x32xf32>
    %cst_81 = arith.constant 1.000000e+00 : f32
    %293 = vector.broadcast %cst_81 : f32 to vector<8x32xf32>
    %294 = arith.subf %292, %293 : vector<8x32xf32>
    %295 = arith.mulf %288, %274 : vector<8x32xf32>
    %296 = arith.mulf %287, %294 : vector<8x32xf32>
    %297 = arith.addf %295, %296 : vector<8x32xf32>
    %298 = math.tanh %297 : vector<8x32xf32>
    %299 = arith.mulf %289, %298 : vector<8x32xf32>
    %300 = arith.truncf %299 : vector<8x32xf32> to vector<8x32xbf16>
    %301 = vector.extract_strided_slice %229 {offsets = [3, 0, 0], sizes = [1, 8, 128], strides = [1, 1, 1]} : vector<8x8x128xf32> to vector<1x8x128xf32>
    %302 = vector.shape_cast %301 : vector<1x8x128xf32> to vector<8x128xf32>
    %cst_82 = arith.constant dense<0.000000e+00> : vector<8x128xf32>
    %303 = tpu.matmul %300, %221, %cst_82 {dimension_numbers = #tpu.dot_dimension_numbers<[1], [0], [0], [1], [0, 0, 1, 1], [], []>} : vector<8x32xbf16>, vector<32x128xbf16>, vector<8x128xf32> -> vector<8x128xf32>
    %304 = arith.addf %302, %303 : vector<8x128xf32>
    %305 = arith.negf %304 : vector<8x128xf32>
    %306 = math.exp %305 : vector<8x128xf32>
    %cst_83 = arith.constant 1.000000e+00 : f32
    %307 = vector.broadcast %cst_83 : f32 to vector<8x128xf32>
    %308 = arith.addf %307, %306 : vector<8x128xf32>
    %309 = arith.divf %307, %308 : vector<8x128xf32>
    %310 = vector.extract_strided_slice %309 {offsets = [0, 0], sizes = [8, 32], strides = [1, 1]} : vector<8x128xf32> to vector<8x32xf32>
    %311 = vector.extract_strided_slice %309 {offsets = [0, 32], sizes = [8, 32], strides = [1, 1]} : vector<8x128xf32> to vector<8x32xf32>
    %312 = vector.extract_strided_slice %309 {offsets = [0, 96], sizes = [8, 32], strides = [1, 1]} : vector<8x128xf32> to vector<8x32xf32>
    %313 = vector.extract_strided_slice %309 {offsets = [0, 64], sizes = [8, 32], strides = [1, 1]} : vector<8x128xf32> to vector<8x32xf32>
    %cst_84 = arith.constant 2.000000e+00 : f32
    %314 = vector.broadcast %cst_84 : f32 to vector<8x32xf32>
    %315 = arith.mulf %314, %313 : vector<8x32xf32>
    %cst_85 = arith.constant 1.000000e+00 : f32
    %316 = vector.broadcast %cst_85 : f32 to vector<8x32xf32>
    %317 = arith.subf %315, %316 : vector<8x32xf32>
    %318 = arith.mulf %311, %297 : vector<8x32xf32>
    %319 = arith.mulf %310, %317 : vector<8x32xf32>
    %320 = arith.addf %318, %319 : vector<8x32xf32>
    %321 = math.tanh %320 : vector<8x32xf32>
    %322 = arith.mulf %312, %321 : vector<8x32xf32>
    %323 = arith.truncf %322 : vector<8x32xf32> to vector<8x32xbf16>
    %324 = vector.extract_strided_slice %229 {offsets = [4, 0, 0], sizes = [1, 8, 128], strides = [1, 1, 1]} : vector<8x8x128xf32> to vector<1x8x128xf32>
    %325 = vector.shape_cast %324 : vector<1x8x128xf32> to vector<8x128xf32>
    %cst_86 = arith.constant dense<0.000000e+00> : vector<8x128xf32>
    %326 = tpu.matmul %323, %221, %cst_86 {dimension_numbers = #tpu.dot_dimension_numbers<[1], [0], [0], [1], [0, 0, 1, 1], [], []>} : vector<8x32xbf16>, vector<32x128xbf16>, vector<8x128xf32> -> vector<8x128xf32>
    %327 = arith.addf %325, %326 : vector<8x128xf32>
    %328 = arith.negf %327 : vector<8x128xf32>
    %329 = math.exp %328 : vector<8x128xf32>
    %cst_87 = arith.constant 1.000000e+00 : f32
    %330 = vector.broadcast %cst_87 : f32 to vector<8x128xf32>
    %331 = arith.addf %330, %329 : vector<8x128xf32>
    %332 = arith.divf %330, %331 : vector<8x128xf32>
    %333 = vector.extract_strided_slice %332 {offsets = [0, 0], sizes = [8, 32], strides = [1, 1]} : vector<8x128xf32> to vector<8x32xf32>
    %334 = vector.extract_strided_slice %332 {offsets = [0, 32], sizes = [8, 32], strides = [1, 1]} : vector<8x128xf32> to vector<8x32xf32>
    %335 = vector.extract_strided_slice %332 {offsets = [0, 96], sizes = [8, 32], strides = [1, 1]} : vector<8x128xf32> to vector<8x32xf32>
    %336 = vector.extract_strided_slice %332 {offsets = [0, 64], sizes = [8, 32], strides = [1, 1]} : vector<8x128xf32> to vector<8x32xf32>
    %cst_88 = arith.constant 2.000000e+00 : f32
    %337 = vector.broadcast %cst_88 : f32 to vector<8x32xf32>
    %338 = arith.mulf %337, %336 : vector<8x32xf32>
    %cst_89 = arith.constant 1.000000e+00 : f32
    %339 = vector.broadcast %cst_89 : f32 to vector<8x32xf32>
    %340 = arith.subf %338, %339 : vector<8x32xf32>
    %341 = arith.mulf %334, %320 : vector<8x32xf32>
    %342 = arith.mulf %333, %340 : vector<8x32xf32>
    %343 = arith.addf %341, %342 : vector<8x32xf32>
    %344 = math.tanh %343 : vector<8x32xf32>
    %345 = arith.mulf %335, %344 : vector<8x32xf32>
    %346 = arith.truncf %345 : vector<8x32xf32> to vector<8x32xbf16>
    %347 = vector.extract_strided_slice %229 {offsets = [5, 0, 0], sizes = [1, 8, 128], strides = [1, 1, 1]} : vector<8x8x128xf32> to vector<1x8x128xf32>
    %348 = vector.shape_cast %347 : vector<1x8x128xf32> to vector<8x128xf32>
    %cst_90 = arith.constant dense<0.000000e+00> : vector<8x128xf32>
    %349 = tpu.matmul %346, %221, %cst_90 {dimension_numbers = #tpu.dot_dimension_numbers<[1], [0], [0], [1], [0, 0, 1, 1], [], []>} : vector<8x32xbf16>, vector<32x128xbf16>, vector<8x128xf32> -> vector<8x128xf32>
    %350 = arith.addf %348, %349 : vector<8x128xf32>
    %351 = arith.negf %350 : vector<8x128xf32>
    %352 = math.exp %351 : vector<8x128xf32>
    %cst_91 = arith.constant 1.000000e+00 : f32
    %353 = vector.broadcast %cst_91 : f32 to vector<8x128xf32>
    %354 = arith.addf %353, %352 : vector<8x128xf32>
    %355 = arith.divf %353, %354 : vector<8x128xf32>
    %356 = vector.extract_strided_slice %355 {offsets = [0, 0], sizes = [8, 32], strides = [1, 1]} : vector<8x128xf32> to vector<8x32xf32>
    %357 = vector.extract_strided_slice %355 {offsets = [0, 32], sizes = [8, 32], strides = [1, 1]} : vector<8x128xf32> to vector<8x32xf32>
    %358 = vector.extract_strided_slice %355 {offsets = [0, 96], sizes = [8, 32], strides = [1, 1]} : vector<8x128xf32> to vector<8x32xf32>
    %359 = vector.extract_strided_slice %355 {offsets = [0, 64], sizes = [8, 32], strides = [1, 1]} : vector<8x128xf32> to vector<8x32xf32>
    %cst_92 = arith.constant 2.000000e+00 : f32
    %360 = vector.broadcast %cst_92 : f32 to vector<8x32xf32>
    %361 = arith.mulf %360, %359 : vector<8x32xf32>
    %cst_93 = arith.constant 1.000000e+00 : f32
    %362 = vector.broadcast %cst_93 : f32 to vector<8x32xf32>
    %363 = arith.subf %361, %362 : vector<8x32xf32>
    %364 = arith.mulf %357, %343 : vector<8x32xf32>
    %365 = arith.mulf %356, %363 : vector<8x32xf32>
    %366 = arith.addf %364, %365 : vector<8x32xf32>
    %367 = math.tanh %366 : vector<8x32xf32>
    %368 = arith.mulf %358, %367 : vector<8x32xf32>
    %369 = arith.truncf %368 : vector<8x32xf32> to vector<8x32xbf16>
    %370 = vector.extract_strided_slice %229 {offsets = [6, 0, 0], sizes = [1, 8, 128], strides = [1, 1, 1]} : vector<8x8x128xf32> to vector<1x8x128xf32>
    %371 = vector.shape_cast %370 : vector<1x8x128xf32> to vector<8x128xf32>
    %cst_94 = arith.constant dense<0.000000e+00> : vector<8x128xf32>
    %372 = tpu.matmul %369, %221, %cst_94 {dimension_numbers = #tpu.dot_dimension_numbers<[1], [0], [0], [1], [0, 0, 1, 1], [], []>} : vector<8x32xbf16>, vector<32x128xbf16>, vector<8x128xf32> -> vector<8x128xf32>
    %373 = arith.addf %371, %372 : vector<8x128xf32>
    %374 = arith.negf %373 : vector<8x128xf32>
    %375 = math.exp %374 : vector<8x128xf32>
    %cst_95 = arith.constant 1.000000e+00 : f32
    %376 = vector.broadcast %cst_95 : f32 to vector<8x128xf32>
    %377 = arith.addf %376, %375 : vector<8x128xf32>
    %378 = arith.divf %376, %377 : vector<8x128xf32>
    %379 = vector.extract_strided_slice %378 {offsets = [0, 0], sizes = [8, 32], strides = [1, 1]} : vector<8x128xf32> to vector<8x32xf32>
    %380 = vector.extract_strided_slice %378 {offsets = [0, 32], sizes = [8, 32], strides = [1, 1]} : vector<8x128xf32> to vector<8x32xf32>
    %381 = vector.extract_strided_slice %378 {offsets = [0, 96], sizes = [8, 32], strides = [1, 1]} : vector<8x128xf32> to vector<8x32xf32>
    %382 = vector.extract_strided_slice %378 {offsets = [0, 64], sizes = [8, 32], strides = [1, 1]} : vector<8x128xf32> to vector<8x32xf32>
    %cst_96 = arith.constant 2.000000e+00 : f32
    %383 = vector.broadcast %cst_96 : f32 to vector<8x32xf32>
    %384 = arith.mulf %383, %382 : vector<8x32xf32>
    %cst_97 = arith.constant 1.000000e+00 : f32
    %385 = vector.broadcast %cst_97 : f32 to vector<8x32xf32>
    %386 = arith.subf %384, %385 : vector<8x32xf32>
    %387 = arith.mulf %380, %366 : vector<8x32xf32>
    %388 = arith.mulf %379, %386 : vector<8x32xf32>
    %389 = arith.addf %387, %388 : vector<8x32xf32>
    %390 = math.tanh %389 : vector<8x32xf32>
    %391 = arith.mulf %381, %390 : vector<8x32xf32>
    %392 = arith.truncf %391 : vector<8x32xf32> to vector<8x32xbf16>
    %393 = vector.extract_strided_slice %229 {offsets = [7, 0, 0], sizes = [1, 8, 128], strides = [1, 1, 1]} : vector<8x8x128xf32> to vector<1x8x128xf32>
    %394 = vector.shape_cast %393 : vector<1x8x128xf32> to vector<8x128xf32>
    %cst_98 = arith.constant dense<0.000000e+00> : vector<8x128xf32>
    %395 = tpu.matmul %392, %221, %cst_98 {dimension_numbers = #tpu.dot_dimension_numbers<[1], [0], [0], [1], [0, 0, 1, 1], [], []>} : vector<8x32xbf16>, vector<32x128xbf16>, vector<8x128xf32> -> vector<8x128xf32>
    %396 = arith.addf %394, %395 : vector<8x128xf32>
    %397 = arith.negf %396 : vector<8x128xf32>
    %398 = math.exp %397 : vector<8x128xf32>
    %cst_99 = arith.constant 1.000000e+00 : f32
    %399 = vector.broadcast %cst_99 : f32 to vector<8x128xf32>
    %400 = arith.addf %399, %398 : vector<8x128xf32>
    %401 = arith.divf %399, %400 : vector<8x128xf32>
    %402 = vector.extract_strided_slice %401 {offsets = [0, 0], sizes = [8, 32], strides = [1, 1]} : vector<8x128xf32> to vector<8x32xf32>
    %403 = vector.extract_strided_slice %401 {offsets = [0, 32], sizes = [8, 32], strides = [1, 1]} : vector<8x128xf32> to vector<8x32xf32>
    %404 = vector.extract_strided_slice %401 {offsets = [0, 96], sizes = [8, 32], strides = [1, 1]} : vector<8x128xf32> to vector<8x32xf32>
    %405 = vector.extract_strided_slice %401 {offsets = [0, 64], sizes = [8, 32], strides = [1, 1]} : vector<8x128xf32> to vector<8x32xf32>
    %cst_100 = arith.constant 2.000000e+00 : f32
    %406 = vector.broadcast %cst_100 : f32 to vector<8x32xf32>
    %407 = arith.mulf %406, %405 : vector<8x32xf32>
    %cst_101 = arith.constant 1.000000e+00 : f32
    %408 = vector.broadcast %cst_101 : f32 to vector<8x32xf32>
    %409 = arith.subf %407, %408 : vector<8x32xf32>
    %410 = arith.mulf %403, %389 : vector<8x32xf32>
    %411 = arith.mulf %402, %409 : vector<8x32xf32>
    %412 = arith.addf %410, %411 : vector<8x32xf32>
    %413 = math.tanh %412 : vector<8x32xf32>
    %414 = arith.mulf %404, %413 : vector<8x32xf32>
    %415 = arith.truncf %414 : vector<8x32xf32> to vector<8x32xbf16>
    %c0_102 = arith.constant 0 : index
    %c0_103 = arith.constant 0 : index
    %416 = vector.load %arg7[%c0_102, %c0_103] : memref<32x128xbf16, #tpu.memory_space<vmem>>, vector<32x128xbf16>
    %cst_104 = arith.constant dense<0.000000e+00> : vector<8x128xf32>
    %417 = tpu.matmul %415, %416, %cst_104 {dimension_numbers = #tpu.dot_dimension_numbers<[1], [0], [0], [1], [0, 0, 1, 1], [], []>} : vector<8x32xbf16>, vector<32x128xbf16>, vector<8x128xf32> -> vector<8x128xf32>
    %c0_105 = arith.constant 0 : index
    %c0_106 = arith.constant 0 : index
    %418 = vector.load %arg8[%c0_105, %c0_106] : memref<1x128xf32, #tpu.memory_space<vmem>>, vector<1x128xf32>
    %419 = vector.broadcast %418 : vector<1x128xf32> to vector<8x128xf32>
    %420 = arith.addf %417, %419 : vector<8x128xf32>
    %c0_107 = arith.constant 0 : index
    %c0_108 = arith.constant 0 : index
    %421 = vector.load %arg9[%c0_107, %c0_108] : memref<8x128xf32, #tpu.memory_space<vmem>>, vector<8x128xf32>
    tpu.vector_store %arg9[%c0_107, %c0_108], %420 {strides = array<i32>} : memref<8x128xf32, #tpu.memory_space<vmem>>, vector<8x128xf32>,
    return
  }
}

</mosaic_0001>

<bundles_post_ra>
// kernel: tpu_custom_call.1
= control target key start
LH: loop header
LB: loop body
LE: loop exit
PB: predicated region body
PF: predicated region fallthrough
CT: control target
= control target key end

     0   :  { %v2001_v1 = vmov 0.0   ;;  %vm2002_vm0 = vmmov 0   ;;  %v2003_v4 = vmov 0   ;;  %s2426_s0 = inlined_call_operand.vmem [shape: f32[8,8,1], index: 0, kind: input, shape index: {}]   ;;  %s2427_s1 = inlined_call_operand.vmem [shape: f32[1,128], index: 1, kind: input, shape index: {}]   ;;  %s2428_s2 = inlined_call_operand.vmem [shape: bf16[32,128], index: 2, kind: input, shape index: {}]   ;;  %s2429_s3 = inlined_call_operand.vmem [shape: f32[1,128], index: 3, kind: input, shape index: {}]   ;;  %s2430_s4 = inlined_call_operand.vmem [shape: bf16[32,128], index: 4, kind: input, shape index: {}]   ;;  %s2431_s5 = inlined_call_operand.vmem [shape: bf16[32,128], index: 5, kind: input, shape index: {}]   ;;  %s2432_s6 = inlined_call_operand.vmem [shape: f32[1,128], index: 6, kind: input, shape index: {}]   ;;  %s2433_s7 = inlined_call_operand.vmem [shape: bf16[32,128], index: 7, kind: input, shape index: {}]   ;;  %s2434_s8 = inlined_call_operand.vmem [shape: f32[1,128], index: 8, kind: input, shape index: {}]   ;;  %s2435_s9 = inlined_call_operand.hbm [shape: f32[8,128], index: 9, kind: output, shape index: {}]  }
   0x1   :  { %v2060_v0 = vld [vmem:[%s2428_s2] sm:$0xff]   ;;  %1713 = vmatprep.subr.bf16.mxu0 %v2001_v1  ;;  %1721 = vmatprep.subr.bf16.mxu1 %v2001_v1  ;;  %v2068_v2 = vld [vmem:[%s2428_s2 + $0x8] sm:$0xff]  }
   0x2   :  { %1714 = vmatpush3.bf16.msra.mxu0 %v2060_v0  ;;  %1717 = vmatprep.mubr.msk.bf16.mxu0 %vm2002_vm0, %v2001_v1  ;;  %v39_v3 = vld [vmem:[%s2426_s0] sm:$0xff] }
   0x3   :  { %1715 = vmatprep.subr.bf16.mxu0 %v2001_v1  ;;  %1867 = vset.pattern.permute.xlu0 %v2003_v4 }
   0x4   :  { %50 = vperm.xlu0 %1867, %v39_v3   ;;  %1722 = vmatpush3.bf16.msra.mxu1 %v2060_v0 }
   0x5   :  { %1723 = vmatprep.subr.bf16.mxu1 %v2001_v1  ;;  %1725 = vmatprep.mubr.msk.bf16.mxu1 %vm2002_vm0, %v2001_v1 }
   0x6   :  { %1716 = vmatpush3.bf16.msra.mxu0 %v2068_v2  ;;  %1868 = vset.pattern.permute.xlu1 %v2003_v4 }
   0x7   :  { %1729 = vmatprep.subr.bf16.mxu0 %v2001_v1 }
   0x8   :  { %14 = vsyncpa [#allocation4], 0  ;;  %1724 = vmatpush3.bf16.msra.mxu1 %v2068_v2  ;;  %v2096_v5 = vld [vmem:[%s2427_s1] ss:$0 sm:$0xff]  ;;  %s2004_s1 = smov 64   ;;  %v40_v27 = vld [vmem:[%s2426_s0 + $0x8] sm:$0xff] }
   0x9   :  { %1718 = vmatmul.mubr.bf16.vlgmr.msra.gmra.mrb[0].mxu0 %v2003_v4  ;;  %1737 = vmatprep.subr.bf16.mxu1 %v2001_v1  ;;  %v2102_v8 = vld [vmem:[%s2429_s3] ss:$0 sm:$0xff]  ;;  %s2005_s3 = smov 32   ;;  %vm128_vm1 = vcmask 261120   ;;  %v41_v52 = vld [vmem:[%s2426_s0 + $0x10] sm:$0xff]  ;;  %vm205_vm2 = vcmask 257024  }
   0xa   :  { %1730 = vmatpush3.bf16.msra.mxu0 %v2060_v0  ;;  %1733 = vmatprep.mubr.msk.bf16.mxu0 %vm2002_vm0, %v2001_v1  ;;  %s2006_s22 = smov [#allocation3]  }
   0xb   :  { %1731 = vmatprep.subr.bf16.mxu0 %v2001_v1 }
   0xe   :  { %1732 = vmatpush3.bf16.msra.mxu0 %v2068_v2 }
   0xf   :  { %1745 = vmatprep.subr.bf16.mxu0 %v2001_v1 }
  0x83   :  { %v51_v6 = vpop.permute.xlu0 %50 }
  0x84   :  { %v94_v7 = vmul.f32 %v2096_v5, %v51_v6 }
  0x86   :  { %v108_v9 = vadd.f32 %v2102_v8, %v94_v7 }
  0xdc   :  { %v166_v10 = vpop.f32.mrb[0].mxu0 }
  0xdd   :  { %v172_v11 = vadd.f32 %v166_v10, %v108_v9  ;;  %v1719_v12 = vpop.f32.mrb[1].mxu0 }
  0xde   :  { %v169_v13 = vpop.f32.mrb[2].mxu0 }
  0xdf   :  { %v1577_v14 = vmul.f32 -1.442695, %v172_v11  ;;  %v1720_v15 = vpop.f32.mrb[3].mxu0 }
  0xe1   :  { %1881 = vpow2.f32 %v1577_v14 }
  0xeb   :  { %v1882_v16 = vpop.eup %1881 }
  0xec   :  { %v176_v17 = vadd.f32 1.0, %v1882_v16 }
  0xee   :  { %1883 = vrcp.f32 %v176_v17 }
  0xf8   :  { %v1884_v18 = vpop.eup %1883 }
  0xf9   :  { %v179_v19 = vmul.f32 2.0, %v1884_v18  ;;  %v181_v23 = vmul.f32 0.0, %v1884_v18 }
  0xfb   :  { %v1578_v20 = vadd.f32 -1.0, %v179_v19  ;;  %v42_v19 = vld [vmem:[%s2426_s0 + $0x18] sm:$0xff] }
  0xfd   :  { %183 = vrot.lane.b32.xlu0 %v1578_v20, %s2004_s1 }
 0x16f   :  { %v184_v21 = vpop.permute.xlu0 %183 }
 0x170   :  { %v186_v22 = vmul.f32 %v1884_v18, %v184_v21 }
 0x172   :  { %188 = vrot.lane.b32.xlu1 %v186_v22, %s2005_s3 }
 0x1e4   :  { %v189_v24 = vpop.permute.xlu1 %188 }
 0x1e5   :  { %v191_v25 = vadd.f32 %v189_v24, %v181_v23 }
 0x1e7   :  { %1885 = vtanh.f32 %v191_v25 }
 0x1f1   :  { %v1886_v26 = vpop.eup %1885 }
 0x1f2   :  { %194 = vrot.lane.b32.xlu1 %v1886_v26, %s2004_s1 }
 0x1f6   :  { %55 = vperm.xlu1 %1868, %v40_v27  }
 0x264   :  { %v195_v28 = vpop.permute.xlu1 %194 }
 0x265   :  { %v197_v29 = vmul.f32 %v1884_v18, %v195_v28 }
 0x267   :  { %v2111_v30 = vpack.c.bf16 %v197_v29, %v197_v29 }
 0x269   :  { %207 = vrot.lane.b32.xlu0 %v2111_v30, %s2005_s3 }
 0x275   :  { %v56_v32 = vpop.permute.xlu1 %55 }
 0x276   :  { %v95_v33 = vmul.f32 %v2096_v5, %v56_v32 }
 0x278   :  { %v109_v34 = vadd.f32 %v2102_v8, %v95_v33 }
 0x2db   :  { %v208_v31 = vpop.permute.xlu0 %207 }
 0x2dc   :  { %1726 = vmatmul.mubr.msk.bf16.vlgmr.msra.gmra.mrb[0].mxu1 %vm128_vm1, %v208_v31 }
 0x2dd   :  { %1738 = vmatpush3.bf16.msra.mxu1 %v2060_v0  ;;  %1741 = vmatprep.mubr.msk.bf16.mxu1 %vm2002_vm0, %v2001_v1 }
 0x2de   :  { %1739 = vmatprep.subr.bf16.mxu1 %v2001_v1 }
 0x2e1   :  { %1740 = vmatpush3.bf16.msra.mxu1 %v2068_v2 }
 0x2e2   :  { %1753 = vmatprep.subr.bf16.mxu1 %v2001_v1 }
 0x3af   :  { %v246_v35 = vpop.f32.mrb[0].mxu1 }
 0x3b0   :  { %v252_v36 = vadd.f32 %v246_v35, %v109_v34  ;;  %v1727_v37 = vpop.f32.mrb[1].mxu1 }
 0x3b1   :  { %v249_v38 = vpop.f32.mrb[2].mxu1 }
 0x3b2   :  { %v1581_v39 = vmul.f32 -1.442695, %v252_v36  ;;  %v1728_v40 = vpop.f32.mrb[3].mxu1 }
 0x3b4   :  { %1887 = vpow2.f32 %v1581_v39 }
 0x3be   :  { %v1888_v41 = vpop.eup %1887 }
 0x3bf   :  { %v256_v42 = vadd.f32 1.0, %v1888_v41 }
 0x3c1   :  { %1889 = vrcp.f32 %v256_v42 }
 0x3cb   :  { %v1890_v43 = vpop.eup %1889 }
 0x3cc   :  { %v259_v44 = vmul.f32 2.0, %v1890_v43  ;;  %v261_v48 = vmul.f32 %v1890_v43, %v191_v25 }
 0x3ce   :  { %v1582_v45 = vadd.f32 -1.0, %v259_v44 }
 0x3d0   :  { %263 = vrot.lane.b32.xlu0 %v1582_v45, %s2004_s1  ;;  %v43_v45 = vld [vmem:[%s2426_s0 + $0x20] sm:$0xff] }
 0x442   :  { %v264_v46 = vpop.permute.xlu0 %263 }
 0x443   :  { %v266_v47 = vmul.f32 %v1890_v43, %v264_v46 }
 0x445   :  { %268 = vrot.lane.b32.xlu1 %v266_v47, %s2005_s3 }
 0x4b7   :  { %v269_v49 = vpop.permute.xlu1 %268 }
 0x4b8   :  { %v271_v50 = vadd.f32 %v269_v49, %v261_v48 }
 0x4ba   :  { %1891 = vtanh.f32 %v271_v50 }
 0x4c4   :  { %v1892_v51 = vpop.eup %1891 }
 0x4c5   :  { %274 = vrot.lane.b32.xlu0 %v1892_v51, %s2004_s1 }
 0x4c9   :  { %60 = vperm.xlu0 %1867, %v41_v52  }
 0x537   :  { %v275_v53 = vpop.permute.xlu0 %274 }
 0x538   :  { %v277_v54 = vmul.f32 %v1890_v43, %v275_v53 }
 0x53a   :  { %v2130_v55 = vpack.c.bf16 %v277_v54, %v277_v54 }
 0x53c   :  { %287 = vrot.lane.b32.xlu1 %v2130_v55, %s2005_s3 }
 0x548   :  { %v61_v57 = vpop.permute.xlu0 %60 }
 0x549   :  { %v96_v58 = vmul.f32 %v2096_v5, %v61_v57 }
 0x54b   :  { %v110_v59 = vadd.f32 %v2102_v8, %v96_v58 }
 0x5ae   :  { %v288_v56 = vpop.permute.xlu1 %287 }
 0x5af   :  { %1734 = vmatmul.mubr.msk.bf16.vlgmr.msra.gmra.mrb[4].mxu0 %vm128_vm1, %v288_v56 }
 0x5b0   :  { %1746 = vmatpush3.bf16.msra.mxu0 %v2060_v0  ;;  %1749 = vmatprep.mubr.msk.bf16.mxu0 %vm2002_vm0, %v2001_v1 }
 0x5b1   :  { %1747 = vmatprep.subr.bf16.mxu0 %v2001_v1 }
 0x5b4   :  { %1748 = vmatpush3.bf16.msra.mxu0 %v2068_v2 }
 0x5b5   :  { %1761 = vmatprep.subr.bf16.mxu0 %v2001_v1 }
 0x682   :  { %v326_v60 = vpop.f32.mrb[4].mxu0 }
 0x683   :  { %v332_v61 = vadd.f32 %v326_v60, %v110_v59  ;;  %v1735_v62 = vpop.f32.mrb[5].mxu0 }
 0x684   :  { %v329_v63 = vpop.f32.mrb[6].mxu0 }
 0x685   :  { %v1585_v3 = vmul.f32 -1.442695, %v332_v61  ;;  %v1736_v6 = vpop.f32.mrb[7].mxu0 }
 0x687   :  { %1893 = vpow2.f32 %v1585_v3 }
 0x691   :  { %v1894_v7 = vpop.eup %1893 }
 0x692   :  { %v336_v9 = vadd.f32 1.0, %v1894_v7 }
 0x694   :  { %1895 = vrcp.f32 %v336_v9 }
 0x69e   :  { %v1896_v10 = vpop.eup %1895 }
 0x69f   :  { %v339_v11 = vmul.f32 2.0, %v1896_v10  ;;  %v341_v15 = vmul.f32 %v1896_v10, %v271_v50 }
 0x6a1   :  { %v1586_v12 = vadd.f32 -1.0, %v339_v11 }
 0x6a3   :  { %343 = vrot.lane.b32.xlu1 %v1586_v12, %s2004_s1 }
 0x715   :  { %v344_v13 = vpop.permute.xlu1 %343 }
 0x716   :  { %v346_v14 = vmul.f32 %v1896_v10, %v344_v13  ;;  %v44_v13 = vld [vmem:[%s2426_s0 + $0x28] sm:$0xff] }
 0x718   :  { %348 = vrot.lane.b32.xlu0 %v346_v14, %s2005_s3 }
 0x78a   :  { %v349_v16 = vpop.permute.xlu0 %348 }
 0x78b   :  { %v351_v17 = vadd.f32 %v349_v16, %v341_v15 }
 0x78d   :  { %1897 = vtanh.f32 %v351_v17 }
 0x797   :  { %v1898_v18 = vpop.eup %1897 }
 0x798   :  { %354 = vrot.lane.b32.xlu1 %v1898_v18, %s2004_s1 }
 0x79c   :  { %65 = vperm.xlu1 %1868, %v42_v19  }
 0x80a   :  { %v355_v20 = vpop.permute.xlu1 %354 }
 0x80b   :  { %v357_v21 = vmul.f32 %v1896_v10, %v355_v20 }
 0x80d   :  { %v2149_v22 = vpack.c.bf16 %v357_v21, %v357_v21 }
 0x80f   :  { %367 = vrot.lane.b32.xlu0 %v2149_v22, %s2005_s3 }
 0x81b   :  { %v66_v24 = vpop.permute.xlu1 %65 }
 0x81c   :  { %v97_v25 = vmul.f32 %v2096_v5, %v66_v24 }
 0x81e   :  { %v111_v26 = vadd.f32 %v2102_v8, %v97_v25 }
 0x881   :  { %v368_v23 = vpop.permute.xlu0 %367 }
 0x882   :  { %1742 = vmatmul.mubr.msk.bf16.vlgmr.msra.gmra.mrb[4].mxu1 %vm128_vm1, %v368_v23 }
 0x883   :  { %1754 = vmatpush3.bf16.msra.mxu1 %v2060_v0  ;;  %1757 = vmatprep.mubr.msk.bf16.mxu1 %vm2002_vm0, %v2001_v1 }
 0x884   :  { %1755 = vmatprep.subr.bf16.mxu1 %v2001_v1 }
 0x887   :  { %1756 = vmatpush3.bf16.msra.mxu1 %v2068_v2 }
 0x888   :  { %1769 = vmatprep.subr.bf16.mxu1 %v2001_v1 }
 0x955   :  { %v406_v27 = vpop.f32.mrb[4].mxu1 }
 0x956   :  { %v412_v28 = vadd.f32 %v406_v27, %v111_v26  ;;  %v1743_v29 = vpop.f32.mrb[5].mxu1 }
 0x957   :  { %v409_v31 = vpop.f32.mrb[6].mxu1 }
 0x958   :  { %v1589_v32 = vmul.f32 -1.442695, %v412_v28  ;;  %v1744_v33 = vpop.f32.mrb[7].mxu1 }
 0x95a   :  { %1899 = vpow2.f32 %v1589_v32 }
 0x964   :  { %v1900_v34 = vpop.eup %1899 }
 0x965   :  { %v416_v35 = vadd.f32 1.0, %v1900_v34 }
 0x967   :  { %1901 = vrcp.f32 %v416_v35 }
 0x971   :  { %v1902_v36 = vpop.eup %1901 }
 0x972   :  { %v419_v37 = vmul.f32 2.0, %v1902_v36  ;;  %v421_v41 = vmul.f32 %v1902_v36, %v351_v17 }
 0x974   :  { %v1590_v38 = vadd.f32 -1.0, %v419_v37 }
 0x976   :  { %423 = vrot.lane.b32.xlu0 %v1590_v38, %s2004_s1  ;;  %v45_v38 = vld [vmem:[%s2426_s0 + $0x30] sm:$0xff] }
 0x9e8   :  { %v424_v39 = vpop.permute.xlu0 %423 }
 0x9e9   :  { %v426_v40 = vmul.f32 %v1902_v36, %v424_v39 }
 0x9eb   :  { %428 = vrot.lane.b32.xlu1 %v426_v40, %s2005_s3 }
 0xa5d   :  { %v429_v42 = vpop.permute.xlu1 %428 }
 0xa5e   :  { %v431_v43 = vadd.f32 %v429_v42, %v421_v41 }
 0xa60   :  { %1903 = vtanh.f32 %v431_v43 }
 0xa6a   :  { %v1904_v44 = vpop.eup %1903 }
 0xa6b   :  { %434 = vrot.lane.b32.xlu0 %v1904_v44, %s2004_s1 }
 0xa6f   :  { %70 = vperm.xlu0 %1867, %v43_v45  }
 0xadd   :  { %v435_v46 = vpop.permute.xlu0 %434 }
 0xade   :  { %v437_v47 = vmul.f32 %v1902_v36, %v435_v46 }
 0xae0   :  { %v2168_v48 = vpack.c.bf16 %v437_v47, %v437_v47 }
 0xae2   :  { %447 = vrot.lane.b32.xlu1 %v2168_v48, %s2005_s3 }
 0xaee   :  { %v71_v50 = vpop.permute.xlu0 %70 }
 0xaef   :  { %v98_v51 = vmul.f32 %v2096_v5, %v71_v50 }
 0xaf1   :  { %v112_v52 = vadd.f32 %v2102_v8, %v98_v51 }
 0xb54   :  { %v448_v49 = vpop.permute.xlu1 %447 }
 0xb55   :  { %1750 = vmatmul.mubr.msk.bf16.vlgmr.msra.gmra.mrb[8].mxu0 %vm128_vm1, %v448_v49 }
 0xb56   :  { %1762 = vmatpush3.bf16.msra.mxu0 %v2060_v0  ;;  %1765 = vmatprep.mubr.msk.bf16.mxu0 %vm2002_vm0, %v2001_v1 }
 0xb57   :  { %1763 = vmatprep.subr.bf16.mxu0 %v2001_v1 }
 0xb5a   :  { %1764 = vmatpush3.bf16.msra.mxu0 %v2068_v2 }
 0xc28   :  { %v486_v53 = vpop.f32.mrb[8].mxu0 }
 0xc29   :  { %v492_v54 = vadd.f32 %v486_v53, %v112_v52  ;;  %v1751_v56 = vpop.f32.mrb[9].mxu0 }
 0xc2a   :  { %v489_v57 = vpop.f32.mrb[10].mxu0 }
 0xc2b   :  { %v1593_v58 = vmul.f32 -1.442695, %v492_v54  ;;  %v1752_v59 = vpop.f32.mrb[11].mxu0 }
 0xc2d   :  { %1905 = vpow2.f32 %v1593_v58 }
 0xc37   :  { %v1906_v60 = vpop.eup %1905 }
 0xc38   :  { %v496_v61 = vadd.f32 1.0, %v1906_v60 }
 0xc3a   :  { %1907 = vrcp.f32 %v496_v61 }
 0xc44   :  { %v1908_v62 = vpop.eup %1907 }
 0xc45   :  { %v499_v63 = vmul.f32 2.0, %v1908_v62  ;;  %v501_v9 = vmul.f32 %v1908_v62, %v431_v43 }
 0xc47   :  { %v1594_v3 = vadd.f32 -1.0, %v499_v63 }
 0xc49   :  { %503 = vrot.lane.b32.xlu1 %v1594_v3, %s2004_s1 }
 0xcbb   :  { %v504_v6 = vpop.permute.xlu1 %503 }
 0xcbc   :  { %v506_v7 = vmul.f32 %v1908_v62, %v504_v6 }
 0xcbe   :  { %508 = vrot.lane.b32.xlu0 %v506_v7, %s2005_s3  ;;  %v1871_v7 = vld [vmem:[%s2430_s4] sm:$0xff]  }
 0xcbf   :  { %1777 = vmatprep.subr.bf16.mxu0 %v1871_v7 }
 0xd30   :  { %v509_v10 = vpop.permute.xlu0 %508 }
 0xd31   :  { %v511_v11 = vadd.f32 %v509_v10, %v501_v9 }
 0xd33   :  { %1909 = vtanh.f32 %v511_v11 }
 0xd3d   :  { %v1910_v12 = vpop.eup %1909 }
 0xd3e   :  { %514 = vrot.lane.b32.xlu1 %v1910_v12, %s2004_s1 }
 0xd42   :  { %75 = vperm.xlu1 %1868, %v44_v13  }
 0xdb0   :  { %v515_v14 = vpop.permute.xlu1 %514 }
 0xdb1   :  { %v517_v15 = vmul.f32 %v1908_v62, %v515_v14 }
 0xdb3   :  { %v2186_v16 = vpack.c.bf16 %v517_v15, %v517_v15  ;;  %v2253_v15 = vld [vmem:[%s2431_s5 + $0x8] sm:$0xff]  }
 0xdb5   :  { %527 = vrot.lane.b32.xlu0 %v2186_v16, %s2005_s3 }
 0xdc1   :  { %v76_v18 = vpop.permute.xlu1 %75 }
 0xdc2   :  { %v99_v19 = vmul.f32 %v2096_v5, %v76_v18 }
 0xdc4   :  { %v113_v20 = vadd.f32 %v2102_v8, %v99_v19 }
 0xe27   :  { %v528_v17 = vpop.permute.xlu0 %527 }
 0xe28   :  { %1758 = vmatmul.mubr.msk.bf16.vlgmr.msra.gmra.mrb[8].mxu1 %vm128_vm1, %v528_v17 }
 0xe29   :  { %1770 = vmatpush3.bf16.msra.mxu1 %v2060_v0  ;;  %1773 = vmatprep.mubr.msk.bf16.mxu1 %vm2002_vm0, %v2001_v1 }
 0xe2a   :  { %1771 = vmatprep.subr.bf16.mxu1 %v2001_v1 }
 0xe2d   :  { %1772 = vmatpush3.bf16.msra.mxu1 %v2068_v2 }
 0xe2e   :  { %1789 = vmatprep.subr.bf16.mxu1 %v2001_v1 }
 0xefb   :  { %v566_v21 = vpop.f32.mrb[8].mxu1 }
 0xefc   :  { %v572_v23 = vadd.f32 %v566_v21, %v113_v20  ;;  %v1759_v24 = vpop.f32.mrb[9].mxu1 }
 0xefd   :  { %v569_v25 = vpop.f32.mrb[10].mxu1 }
 0xefe   :  { %v1597_v26 = vmul.f32 -1.442695, %v572_v23  ;;  %v1760_v0 = vpop.f32.mrb[11].mxu1 }
 0xf00   :  { %1911 = vpow2.f32 %v1597_v26  ;;  %v2280_v26 = vld [vmem:[%s2432_s6] ss:$0 sm:$0xff] }
 0xf0a   :  { %v1912_v27 = vpop.eup %1911 }
 0xf0b   :  { %v576_v28 = vadd.f32 1.0, %v1912_v27 }
 0xf0d   :  { %1913 = vrcp.f32 %v576_v28 }
 0xf17   :  { %v1914_v29 = vpop.eup %1913 }
 0xf18   :  { %v579_v31 = vmul.f32 2.0, %v1914_v29  ;;  %v581_v34 = vmul.f32 %v1914_v29, %v511_v11 }
 0xf1a   :  { %v1598_v2 = vadd.f32 -1.0, %v579_v31 }
 0xf1c   :  { %583 = vrot.lane.b32.xlu0 %v1598_v2, %s2004_s1 }
 0xf8e   :  { %v584_v32 = vpop.permute.xlu0 %583 }
 0xf8f   :  { %v586_v33 = vmul.f32 %v1914_v29, %v584_v32 }
 0xf91   :  { %588 = vrot.lane.b32.xlu1 %v586_v33, %s2005_s3 }
0x1003   :  { %v589_v35 = vpop.permute.xlu1 %588 }
0x1004   :  { %v591_v36 = vadd.f32 %v589_v35, %v581_v34 }
0x1006   :  { %1915 = vtanh.f32 %v591_v36 }
0x1010   :  { %v1916_v37 = vpop.eup %1915 }
0x1011   :  { %594 = vrot.lane.b32.xlu0 %v1916_v37, %s2004_s1 }
0x1015   :  { %80 = vperm.xlu0 %1867, %v45_v38  }
0x1083   :  { %v595_v39 = vpop.permute.xlu0 %594 }
0x1084   :  { %v597_v40 = vmul.f32 %v1914_v29, %v595_v39 }
0x1086   :  { %v2205_v41 = vpack.c.bf16 %v597_v40, %v597_v40 }
0x1088   :  { %607 = vrot.lane.b32.xlu1 %v2205_v41, %s2005_s3 }
0x1094   :  { %v81_v43 = vpop.permute.xlu0 %80 }
0x1095   :  { %v100_v44 = vmul.f32 %v2096_v5, %v81_v43 }
0x1097   :  { %v114_v45 = vadd.f32 %v2102_v8, %v100_v44 }
0x10fa   :  { %v608_v42 = vpop.permute.xlu1 %607 }
0x10fb   :  { %1766 = vmatmul.mubr.msk.bf16.vlgmr.msra.gmra.mrb[12].mxu0 %vm128_vm1, %v608_v42 }
0x10fc   :  { %1778 = vmatpush3.bf16.msra.mxu0 %v1871_v7 }
0x11ce   :  { %v646_v46 = vpop.f32.mrb[12].mxu0 }
0x11cf   :  { %v652_v47 = vadd.f32 %v646_v46, %v114_v45  ;;  %v1767_v49 = vpop.f32.mrb[13].mxu0  ;;  %v46_v45 = vld [vmem:[%s2426_s0 + $0x38] sm:$0xff] }
0x11d0   :  { %v649_v50 = vpop.f32.mrb[14].mxu0 }
0x11d1   :  { %v1601_v51 = vmul.f32 -1.442695, %v652_v47  ;;  %v1768_v52 = vpop.f32.mrb[15].mxu0 }
0x11d3   :  { %1917 = vpow2.f32 %v1601_v51 }
0x11dd   :  { %v1918_v53 = vpop.eup %1917 }
0x11de   :  { %v656_v54 = vadd.f32 1.0, %v1918_v53 }
0x11e0   :  { %1919 = vrcp.f32 %v656_v54 }
0x11ea   :  { %v1920_v56 = vpop.eup %1919 }
0x11eb   :  { %v659_v57 = vmul.f32 2.0, %v1920_v56  ;;  %v661_v61 = vmul.f32 %v1920_v56, %v591_v36 }
0x11ed   :  { %v1602_v58 = vadd.f32 -1.0, %v659_v57 }
0x11ef   :  { %663 = vrot.lane.b32.xlu1 %v1602_v58, %s2004_s1 }
0x1261   :  { %v664_v59 = vpop.permute.xlu1 %663 }
0x1262   :  { %v666_v60 = vmul.f32 %v1920_v56, %v664_v59 }
0x1264   :  { %668 = vrot.lane.b32.xlu0 %v666_v60, %s2005_s3 }
0x1268   :  { %202 = vrot.lane.b32.xlu0 %v2111_v30, %s2005_s3  ;;  %v1872_v30 = vld [vmem:[%s2430_s4 + $0x8] sm:$0xff]  }
0x1269   :  { %1779 = vmatprep.subr.bf16.mxu0 %v1872_v30 }
0x126a   :  { %1780 = vmatpush3.bf16.msra.mxu0 %v1872_v30 }
0x126b   :  { %1805 = vmatprep.subr.bf16.mxu0 %v2001_v1 }
0x126c   :  { %362 = vrot.lane.b32.xlu0 %v2149_v22, %s2005_s3 }
0x12d6   :  { %v669_v62 = vpop.permute.xlu0 %668 }
0x12d7   :  { %v2218_v63 = vadd.f32 %v669_v62, %v661_v61 }
0x12d9   :  { %1921 = vtanh.f32 %v2218_v63 }
0x12da   :  { %v203_v3 = vpop.permute.xlu0 %202 }
0x12db   :  { %206 = vst.msk [vmem:[#allocation2] sm:$0xf] %vm205_vm2, %v203_v3 }
0x12de   :  { %v363_v6 = vpop.permute.xlu0 %362 }
0x12df   :  { %366 = vst.msk [vmem:[#allocation2 + $0x8] sm:$0xf] %vm205_vm2, %v363_v6 }
0x12e3   :  { %v1922_v22 = vpop.eup %1921 }
0x12e4   :  { %674 = vrot.lane.b32.xlu1 %v1922_v22, %s2004_s1 }
0x12e8   :  { %282 = vrot.lane.b32.xlu1 %v2130_v55, %s2005_s3 }
0x12ec   :  { %442 = vrot.lane.b32.xlu1 %v2168_v48, %s2005_s3  ;;  %v2245_v48 = vld [vmem:[%s2431_s5] sm:$0xff]  }
0x1356   :  { %v675_v9 = vpop.permute.xlu1 %674 }
0x1357   :  { %v677_v10 = vmul.f32 %v1920_v56, %v675_v9 }
0x1359   :  { %v2235_v11 = vpack.c.bf16 %v677_v10, %v677_v10 }
0x135a   :  { %v283_v12 = vpop.permute.xlu1 %282 }
0x135b   :  { %286 = vst.msk [vmem:[#allocation2 + $0x4] sm:$0xf] %vm205_vm2, %v283_v12  ;;  %687 = vrot.lane.b32.xlu0 %v2235_v11, %s2005_s3 }
0x135e   :  { %v443_v13 = vpop.permute.xlu1 %442 }
0x135f   :  { %446 = vst.msk [vmem:[#allocation2 + $0xc] sm:$0xf] %vm205_vm2, %v443_v13 }
0x1362   :  { %v1873_v14 = vld [vmem:[#allocation2] sm:$0xff]  }
0x1363   :  { %1781 = vmatprep.mubr.msk.bf16.mxu0 %vm128_vm1, %v1873_v14 }
0x1366   :  { %v1874_v55 = vld [vmem:[#allocation2 + $0x8] sm:$0xff]  }
0x1367   :  { %1782 = vmatmul.mubr.msk.bf16.vlgmr.msra.gmra.mrb[16].mxu0 %vm128_vm1, %v1874_v55 }
0x1368   :  { %1806 = vmatpush3.bf16.msra.mxu0 %v2245_v48 }
0x1369   :  { %1807 = vmatprep.subr.bf16.mxu0 %v2001_v1 }
0x136c   :  { %1808 = vmatpush3.bf16.msra.mxu0 %v2253_v15 }
0x136d   :  { %1821 = vmatprep.subr.bf16.mxu0 %v2001_v1 }
0x13cd   :  { %v688_v17 = vpop.permute.xlu0 %687 }
0x13ce   :  { %1774 = vmatmul.mubr.msk.bf16.vlgmr.msra.gmra.mrb[12].mxu1 %vm128_vm1, %v688_v17 }
0x13cf   :  { %1790 = vmatpush3.bf16.msra.mxu1 %v2245_v48  ;;  %1793 = vmatprep.mubr.msk.bf16.mxu1 %vm2002_vm0, %v2001_v1 }
0x13d0   :  { %1791 = vmatprep.subr.bf16.mxu1 %v2001_v1 }
0x13d3   :  { %1792 = vmatpush3.bf16.msra.mxu1 %v2253_v15 }
0x13d4   :  { %1797 = vmatprep.subr.bf16.mxu1 %v2001_v1 }
0x13d6   :  { %1794 = vmatmul.mubr.bf16.vlgmr.msra.gmra.mrb[16].mxu1 %v2003_v4 }
0x13d7   :  { %1798 = vmatpush3.bf16.msra.mxu1 %v2245_v48  ;;  %1801 = vmatprep.mubr.msk.bf16.mxu1 %vm2002_vm0, %v2001_v1 }
0x13d8   :  { %1799 = vmatprep.subr.bf16.mxu1 %v2001_v1 }
0x13db   :  { %1800 = vmatpush3.bf16.msra.mxu1 %v2253_v15 }
0x13dc   :  { %1813 = vmatprep.subr.bf16.mxu1 %v2001_v1 }
0x143a   :  { %v2271_v18 = vpop.f32.mrb[16].mxu0 }
0x143b   :  { %v868_v19 = vpop.f32.mrb[17].mxu0 }
0x143c   :  { %v2273_v20 = vpop.f32.mrb[18].mxu0  ;;  %v869_v0 = vadd.f32 %v2280_v26, %v868_v19 }
0x143d   :  { %v2275_v21 = vpop.f32.mrb[19].mxu0 }
0x143e   :  { %v872_v30 = vadd.f32 %v2280_v26, %v2275_v21 }
0x14a1   :  { %v726_v23 = vpop.f32.mrb[12].mxu1 }
0x14a2   :  { %v1775_v4 = vpop.f32.mrb[13].mxu1 }
0x14a3   :  { %v729_v24 = vpop.f32.mrb[14].mxu1 }
0x14a4   :  { %v1776_v25 = vpop.f32.mrb[15].mxu1 }
0x14a9   :  { %v945_v27 = vpop.f32.mrb[16].mxu1 }
0x14aa   :  { %v951_v28 = vadd.f32 %v945_v27, %v869_v0  ;;  %v1795_v29 = vpop.f32.mrb[17].mxu1 }
0x14ab   :  { %v948_v31 = vpop.f32.mrb[18].mxu1 }
0x14ac   :  { %v1621_v2 = vmul.f32 -1.442695, %v951_v28  ;;  %v1796_v32 = vpop.f32.mrb[19].mxu1 }
0x14ae   :  { %1923 = vpow2.f32 %v1621_v2 }
0x14b8   :  { %v1924_v33 = vpop.eup %1923 }
0x14b9   :  { %v955_v34 = vadd.f32 1.0, %v1924_v33 }
0x14bb   :  { %1925 = vrcp.f32 %v955_v34 }
0x14c5   :  { %v1926_v35 = vpop.eup %1925 }
0x14c6   :  { %v958_v36 = vmul.f32 2.0, %v1926_v35  ;;  %v960_v40 = vmul.f32 0.0, %v1926_v35 }
0x14c8   :  { %v1622_v37 = vadd.f32 -1.0, %v958_v36 }
0x14ca   :  { %962 = vrot.lane.b32.xlu1 %v1622_v37, %s2004_s1 }
0x153c   :  { %v963_v38 = vpop.permute.xlu1 %962 }
0x153d   :  { %v965_v39 = vmul.f32 %v1926_v35, %v963_v38 }
0x153f   :  { %967 = vrot.lane.b32.xlu0 %v965_v39, %s2005_s3 }
0x15b1   :  { %v968_v42 = vpop.permute.xlu0 %967 }
0x15b2   :  { %v2285_v43 = vadd.f32 %v968_v42, %v960_v40 }
0x15b4   :  { %1927 = vtanh.f32 %v2285_v43 }
0x15be   :  { %v1928_v44 = vpop.eup %1927 }
0x15bf   :  { %973 = vrot.lane.b32.xlu1 %v1928_v44, %s2004_s1 }
0x15c3   :  { %85 = vperm.xlu1 %1868, %v46_v45  }
0x1631   :  { %v974_v46 = vpop.permute.xlu1 %973 }
0x1632   :  { %v976_v47 = vmul.f32 %v1926_v35, %v974_v46 }
0x1634   :  { %v977_v49 = vpack.c.bf16 %v976_v47, %v976_v47 }
0x1636   :  { %979 = vrot.lane.b32.xlu0 %v977_v49, %s2005_s3 }
0x1642   :  { %v86_v50 = vpop.permute.xlu1 %85 }
0x1643   :  { %v101_v51 = vmul.f32 %v2096_v5, %v86_v50 }
0x1645   :  { %v115_v52 = vadd.f32 %v2102_v8, %v101_v51 }
0x1647   :  { %v732_v53 = vadd.f32 %v726_v23, %v115_v52 }
0x1649   :  { %v1605_v54 = vmul.f32 -1.442695, %v732_v53 }
0x164b   :  { %1929 = vpow2.f32 %v1605_v54 }
0x1655   :  { %v1930_v56 = vpop.eup %1929 }
0x1656   :  { %v736_v57 = vadd.f32 1.0, %v1930_v56 }
0x1658   :  { %1931 = vrcp.f32 %v736_v57 }
0x1662   :  { %v1932_v58 = vpop.eup %1931 }
0x1663   :  { %v739_v59 = vmul.f32 2.0, %v1932_v58  ;;  %v741_v62 = vmul.f32 %v1932_v58, %v2218_v63 }
0x1665   :  { %v1606_v60 = vadd.f32 -1.0, %v739_v59 }
0x1667   :  { %743 = vrot.lane.b32.xlu0 %v1606_v60, %s2004_s1 }
0x16a8   :  { %v980_v61 = vpop.permute.xlu0 %979 }
0x16a9   :  { %1802 = vmatmul.mubr.msk.bf16.vlgmr.msra.gmra.mrb[20].mxu1 %vm128_vm1, %v980_v61 }
0x16aa   :  { %1814 = vmatpush3.bf16.msra.mxu1 %v2245_v48  ;;  %1817 = vmatprep.mubr.msk.bf16.mxu1 %vm2002_vm0, %v2001_v1 }
0x16ab   :  { %1815 = vmatprep.subr.bf16.mxu1 %v2001_v1 }
0x16ae   :  { %1816 = vmatpush3.bf16.msra.mxu1 %v2253_v15 }
0x16af   :  { %1829 = vmatprep.subr.bf16.mxu1 %v2001_v1 }
0x16d9   :  { %v744_v5 = vpop.permute.xlu0 %743 }
0x16da   :  { %v746_v8 = vmul.f32 %v1932_v58, %v744_v5 }
0x16dc   :  { %748 = vrot.lane.b32.xlu0 %v746_v8, %s2005_s3 }
0x174e   :  { %v749_v3 = vpop.permute.xlu0 %748 }
0x174f   :  { %v751_v6 = vadd.f32 %v749_v3, %v741_v62 }
0x1751   :  { %1933 = vtanh.f32 %v751_v6  ;;  %v880_v6 = vadd.f32 %v2273_v20, %v2280_v26 }
0x175b   :  { %v1934_v7 = vpop.eup %1933 }
0x175c   :  { %754 = vrot.lane.b32.xlu0 %v1934_v7, %s2004_s1 }
0x1760   :  { %522 = vrot.lane.b32.xlu0 %v2186_v16, %s2005_s3 }
0x1764   :  { %682 = vrot.lane.b32.xlu0 %v2235_v11, %s2005_s3 }
0x177c   :  { %v1018_v22 = vpop.f32.mrb[20].mxu1 }
0x177d   :  { %v1024_v9 = vadd.f32 %v1018_v22, %v872_v30  ;;  %v1803_v10 = vpop.f32.mrb[21].mxu1 }
0x177e   :  { %v1021_v12 = vpop.f32.mrb[22].mxu1 }
0x177f   :  { %v1624_v63 = vmul.f32 -1.442695, %v1024_v9  ;;  %v1804_v13 = vpop.f32.mrb[23].mxu1 }
0x1781   :  { %1935 = vpow2.f32 %v1624_v63 }
0x178b   :  { %v1936_v14 = vpop.eup %1935 }
0x178c   :  { %v1028_v55 = vadd.f32 1.0, %v1936_v14 }
0x178e   :  { %1937 = vrcp.f32 %v1028_v55 }
0x1798   :  { %v1938_v17 = vpop.eup %1937 }
0x1799   :  { %v1031_v19 = vmul.f32 2.0, %v1938_v17  ;;  %v1033_v25 = vmul.f32 %v1938_v17, %v2285_v43  ;;  %v877_v43 = vadd.f32 %v2271_v18, %v2280_v26 }
0x179b   :  { %v1625_v23 = vadd.f32 -1.0, %v1031_v19 }
0x179d   :  { %1035 = vrot.lane.b32.xlu1 %v1625_v23, %s2004_s1 }
0x17ce   :  { %v755_v16 = vpop.permute.xlu0 %754 }
0x17cf   :  { %v757_v29 = vmul.f32 %v1932_v58, %v755_v16 }
0x17d1   :  { %v1655_v31 = vpack.c.bf16 %v757_v29, %v757_v29 }
0x17d2   :  { %v523_v11 = vpop.permute.xlu0 %522 }
0x17d3   :  { %526 = vst.msk [vmem:[#allocation2 + $0x10] sm:$0xf] %vm205_vm2, %v523_v11 }
0x17d6   :  { %v683_v21 = vpop.permute.xlu0 %682 }
0x17d7   :  { %686 = vst.msk [vmem:[#allocation2 + $0x18] sm:$0xf] %vm205_vm2, %v683_v21 }
0x180f   :  { %v1036_v4 = vpop.permute.xlu1 %1035 }
0x1810   :  { %v1038_v24 = vmul.f32 %v1938_v17, %v1036_v4 }
0x1812   :  { %1040 = vrot.lane.b32.xlu1 %v1038_v24, %s2005_s3 }
0x1884   :  { %v1041_v0 = vpop.permute.xlu1 %1040 }
0x1885   :  { %v1043_v27 = vadd.f32 %v1041_v0, %v1033_v25 }
0x1887   :  { %1939 = vtanh.f32 %v1043_v27 }
0x1891   :  { %v1940_v28 = vpop.eup %1939 }
0x1892   :  { %1046 = vrot.lane.b32.xlu1 %v1940_v28, %s2004_s1 }
0x1896   :  { %602 = vrot.lane.b32.xlu1 %v2205_v41, %s2005_s3 }
0x189a   :  { %762 = vrot.lane.b32.xlu1 %v1655_v31, %s2005_s3 }
0x1904   :  { %v1047_v2 = vpop.permute.xlu1 %1046 }
0x1905   :  { %v1049_v32 = vmul.f32 %v1938_v17, %v1047_v2 }
0x1907   :  { %v1050_v33 = vpack.c.bf16 %v1049_v32, %v1049_v32 }
0x1908   :  { %v603_v34 = vpop.permute.xlu1 %602 }
0x1909   :  { %606 = vst.msk [vmem:[#allocation2 + $0x14] sm:$0xf] %vm205_vm2, %v603_v34  ;;  %1052 = vrot.lane.b32.xlu0 %v1050_v33, %s2005_s3 }
0x190c   :  { %v763_v35 = vpop.permute.xlu1 %762 }
0x190d   :  { %766 = vst.msk [vmem:[#allocation2 + $0x1c] sm:$0xf] %vm205_vm2, %v763_v35 }
0x1910   :  { %v1877_v36 = vld [vmem:[#allocation2 + $0x10] sm:$0xff]  }
0x1911   :  { %1785 = vmatprep.mubr.msk.bf16.mxu0 %vm128_vm1, %v1877_v36 }
0x1914   :  { %v1878_v37 = vld [vmem:[#allocation2 + $0x18] sm:$0xff]  }
0x1915   :  { %1786 = vmatmul.mubr.msk.bf16.gmra.mrb[20].mxu0 %vm128_vm1, %v1878_v37 }
0x1916   :  { %1809 = vmatprep.mubr.msk.bf16.mxu0 %vm2002_vm0, %v2001_v1 }
0x197b   :  { %v1053_v41 = vpop.permute.xlu0 %1052 }
0x197c   :  { %1810 = vmatmul.mubr.msk.bf16.vlgmr.msra.gmra.mrb[24].mxu0 %vm128_vm1, %v1053_v41 }
0x197d   :  { %1822 = vmatpush3.bf16.msra.mxu0 %v2245_v48  ;;  %1825 = vmatprep.mubr.msk.bf16.mxu0 %vm2002_vm0, %v2001_v1 }
0x197e   :  { %1823 = vmatprep.subr.bf16.mxu0 %v2001_v1 }
0x1981   :  { %1824 = vmatpush3.bf16.msra.mxu0 %v2253_v15 }
0x1982   :  { %1837 = vmatprep.subr.bf16.mxu0 %v2001_v1 }
0x19e8   :  { %v2335_v38 = vpop.f32.mrb[20].mxu0 }
0x19e9   :  { %v2337_v39 = vpop.f32.mrb[21].mxu0 }
0x19ea   :  { %v2339_v40 = vpop.f32.mrb[22].mxu0 }
0x19eb   :  { %v2341_v42 = vpop.f32.mrb[23].mxu0 }
0x1a4f   :  { %v1091_v44 = vpop.f32.mrb[24].mxu0 }
0x1a50   :  { %v1097_v45 = vadd.f32 %v1091_v44, %v877_v43  ;;  %v1811_v46 = vpop.f32.mrb[25].mxu0 }
0x1a51   :  { %v1094_v47 = vpop.f32.mrb[26].mxu0 }
0x1a52   :  { %v1627_v49 = vmul.f32 -1.442695, %v1097_v45  ;;  %v1812_v50 = vpop.f32.mrb[27].mxu0 }
0x1a54   :  { %1941 = vpow2.f32 %v1627_v49 }
0x1a5e   :  { %v1942_v51 = vpop.eup %1941 }
0x1a5f   :  { %v1101_v52 = vadd.f32 1.0, %v1942_v51 }
0x1a61   :  { %1943 = vrcp.f32 %v1101_v52 }
0x1a6b   :  { %v1944_v53 = vpop.eup %1943 }
0x1a6c   :  { %v1104_v54 = vmul.f32 2.0, %v1944_v53  ;;  %v1106_v18 = vmul.f32 %v1944_v53, %v1043_v27  ;;  %v885_v27 = vadd.f32 %v2280_v26, %v2337_v39 }
0x1a6e   :  { %v1628_v56 = vadd.f32 -1.0, %v1104_v54 }
0x1a70   :  { %1108 = vrot.lane.b32.xlu1 %v1628_v56, %s2004_s1 }
0x1ae2   :  { %v1109_v57 = vpop.permute.xlu1 %1108 }
0x1ae3   :  { %v1111_v58 = vmul.f32 %v1944_v53, %v1109_v57 }
0x1ae5   :  { %1113 = vrot.lane.b32.xlu0 %v1111_v58, %s2005_s3 }
0x1b57   :  { %v1114_v59 = vpop.permute.xlu0 %1113 }
0x1b58   :  { %v1116_v60 = vadd.f32 %v1114_v59, %v1106_v18 }
0x1b5a   :  { %1945 = vtanh.f32 %v1116_v60 }
0x1b64   :  { %v1946_v61 = vpop.eup %1945 }
0x1b65   :  { %1119 = vrot.lane.b32.xlu1 %v1946_v61, %s2004_s1 }
0x1bd7   :  { %v1120_v5 = vpop.permute.xlu1 %1119 }
0x1bd8   :  { %v1122_v8 = vmul.f32 %v1944_v53, %v1120_v5  ;;  %v888_v53 = vadd.f32 %v2280_v26, %v2341_v42 }
0x1bda   :  { %v1123_v62 = vpack.c.bf16 %v1122_v8, %v1122_v8 }
0x1bdc   :  { %1125 = vrot.lane.b32.xlu0 %v1123_v62, %s2005_s3 }
0x1c4e   :  { %v1126_v3 = vpop.permute.xlu0 %1125 }
0x1c4f   :  { %1818 = vmatmul.mubr.msk.bf16.vlgmr.msra.gmra.mrb[24].mxu1 %vm128_vm1, %v1126_v3 }
0x1c50   :  { %1830 = vmatpush3.bf16.msra.mxu1 %v2245_v48  ;;  %1833 = vmatprep.mubr.msk.bf16.mxu1 %vm2002_vm0, %v2001_v1 }
0x1c51   :  { %1831 = vmatprep.subr.bf16.mxu1 %v2001_v1 }
0x1c54   :  { %1832 = vmatpush3.bf16.msra.mxu1 %v2253_v15 }
0x1c55   :  { %1845 = vmatprep.subr.bf16.mxu1 %v2001_v1 }
0x1d22   :  { %v1164_v7 = vpop.f32.mrb[24].mxu1 }
0x1d23   :  { %v1170_v30 = vadd.f32 %v1164_v7, %v880_v6  ;;  %v1819_v22 = vpop.f32.mrb[25].mxu1 }
0x1d24   :  { %v1167_v9 = vpop.f32.mrb[26].mxu1 }
0x1d25   :  { %v1630_v10 = vmul.f32 -1.442695, %v1170_v30  ;;  %v1820_v12 = vpop.f32.mrb[27].mxu1 }
0x1d26   :  { %v893_v12 = vadd.f32 %v2335_v38, %v2280_v26 }
0x1d27   :  { %1947 = vpow2.f32 %v1630_v10 }
0x1d31   :  { %v1948_v63 = vpop.eup %1947 }
0x1d32   :  { %v1174_v13 = vadd.f32 1.0, %v1948_v63 }
0x1d34   :  { %1949 = vrcp.f32 %v1174_v13 }
0x1d3e   :  { %v1950_v14 = vpop.eup %1949 }
0x1d3f   :  { %v1177_v55 = vmul.f32 2.0, %v1950_v14  ;;  %v1179_v20 = vmul.f32 %v1950_v14, %v1116_v60 }
0x1d41   :  { %v1631_v17 = vadd.f32 -1.0, %v1177_v55 }
0x1d43   :  { %1181 = vrot.lane.b32.xlu1 %v1631_v17, %s2004_s1 }
0x1db5   :  { %v1182_v19 = vpop.permute.xlu1 %1181 }
0x1db6   :  { %v1184_v23 = vmul.f32 %v1950_v14, %v1182_v19 }
0x1db8   :  { %1186 = vrot.lane.b32.xlu0 %v1184_v23, %s2005_s3 }
0x1e2a   :  { %v1187_v16 = vpop.permute.xlu0 %1186 }
0x1e2b   :  { %v1189_v11 = vadd.f32 %v1187_v16, %v1179_v20 }
0x1e2d   :  { %1951 = vtanh.f32 %v1189_v11 }
0x1e37   :  { %v1952_v21 = vpop.eup %1951 }
0x1e38   :  { %1192 = vrot.lane.b32.xlu1 %v1952_v21, %s2004_s1 }
0x1eaa   :  { %v1193_v4 = vpop.permute.xlu1 %1192 }
0x1eab   :  { %v1195_v24 = vmul.f32 %v1950_v14, %v1193_v4 }
0x1ead   :  { %v1196_v25 = vpack.c.bf16 %v1195_v24, %v1195_v24 }
0x1eaf   :  { %1198 = vrot.lane.b32.xlu0 %v1196_v25, %s2005_s3 }
0x1f21   :  { %v1199_v0 = vpop.permute.xlu0 %1198 }
0x1f22   :  { %1826 = vmatmul.mubr.msk.bf16.vlgmr.msra.gmra.mrb[28].mxu0 %vm128_vm1, %v1199_v0 }
0x1f23   :  { %1838 = vmatpush3.bf16.msra.mxu0 %v2245_v48  ;;  %1841 = vmatprep.mubr.msk.bf16.mxu0 %vm2002_vm0, %v2001_v1 }
0x1f24   :  { %1839 = vmatprep.subr.bf16.mxu0 %v2001_v1 }
0x1f27   :  { %1840 = vmatpush3.bf16.msra.mxu0 %v2253_v15 }
0x1f28   :  { %1853 = vmatprep.subr.bf16.mxu0 %v2001_v1 }
0x1ff5   :  { %v1237_v28 = vpop.f32.mrb[28].mxu0 }
0x1ff6   :  { %v1243_v29 = vadd.f32 %v1237_v28, %v885_v27  ;;  %v1827_v31 = vpop.f32.mrb[29].mxu0 }
0x1ff7   :  { %v1240_v2 = vpop.f32.mrb[30].mxu0 }
0x1ff8   :  { %v1633_v32 = vmul.f32 -1.442695, %v1243_v29  ;;  %v1828_v33 = vpop.f32.mrb[31].mxu0 }
0x1ffa   :  { %1953 = vpow2.f32 %v1633_v32  ;;  %v896_v32 = vadd.f32 %v2339_v40, %v2280_v26 }
0x2004   :  { %v1954_v34 = vpop.eup %1953 }
0x2005   :  { %v1247_v35 = vadd.f32 1.0, %v1954_v34 }
0x2007   :  { %1955 = vrcp.f32 %v1247_v35 }
0x2011   :  { %v1956_v36 = vpop.eup %1955 }
0x2012   :  { %v1250_v37 = vmul.f32 2.0, %v1956_v36  ;;  %v1252_v39 = vmul.f32 %v1956_v36, %v1189_v11 }
0x2014   :  { %v1634_v41 = vadd.f32 -1.0, %v1250_v37 }
0x2016   :  { %1254 = vrot.lane.b32.xlu1 %v1634_v41, %s2004_s1 }
0x2088   :  { %v1255_v43 = vpop.permute.xlu1 %1254 }
0x2089   :  { %v1257_v44 = vmul.f32 %v1956_v36, %v1255_v43 }
0x208b   :  { %1259 = vrot.lane.b32.xlu0 %v1257_v44, %s2005_s3 }
0x20fd   :  { %v1260_v45 = vpop.permute.xlu0 %1259 }
0x20fe   :  { %v1262_v46 = vadd.f32 %v1260_v45, %v1252_v39 }
0x2100   :  { %1957 = vtanh.f32 %v1262_v46 }
0x210a   :  { %v1958_v47 = vpop.eup %1957 }
0x210b   :  { %1265 = vrot.lane.b32.xlu1 %v1958_v47, %s2004_s1 }
0x217d   :  { %v1266_v49 = vpop.permute.xlu1 %1265 }
0x217e   :  { %v1268_v50 = vmul.f32 %v1956_v36, %v1266_v49 }
0x2180   :  { %v1269_v51 = vpack.c.bf16 %v1268_v50, %v1268_v50 }
0x2182   :  { %1271 = vrot.lane.b32.xlu0 %v1269_v51, %s2005_s3  ;;  %v1879_v51 = vld [vmem:[%s2433_s7] sm:$0xff]  }
0x21f4   :  { %v1272_v52 = vpop.permute.xlu0 %1271 }
0x21f5   :  { %1834 = vmatmul.mubr.msk.bf16.vlgmr.msra.gmra.mrb[28].mxu1 %vm128_vm1, %v1272_v52  ;;  %v1880_v52 = vld [vmem:[%s2433_s7 + $0x8] sm:$0xff]   ;;  %s1565_s7 = sshll.u32 %s2006_s22, 4  ;;  %s1566_s7 = int_to_ptr.vmem [resolvable:$true] %s1565_s7 }
0x21f6   :  { %1846 = vmatpush3.bf16.msra.mxu1 %v2245_v48  ;;  %1849 = vmatprep.mubr.msk.bf16.mxu1 %vm2002_vm0, %v2001_v1  ;;  %p1982_p1 = scmp.lt.s32.totalorder %s1566_s7, %s1566_s7 }
0x21f7   :  { %1847 = vmatprep.subr.bf16.mxu1 %v2001_v1 }
0x21fa   :  { %1848 = vmatpush3.bf16.msra.mxu1 %v2253_v15 }
0x22c8   :  { %v1310_v54 = vpop.f32.mrb[28].mxu1 }
0x22c9   :  { %v1316_v56 = vadd.f32 %v1310_v54, %v888_v53  ;;  %v1835_v57 = vpop.f32.mrb[29].mxu1 }
0x22ca   :  { %v1313_v58 = vpop.f32.mrb[30].mxu1 }
0x22cb   :  { %v1636_v18 = vmul.f32 -1.442695, %v1316_v56  ;;  %v1836_v59 = vpop.f32.mrb[31].mxu1 }
0x22cd   :  { %1959 = vpow2.f32 %v1636_v18  ;;  %v1644_v18 = vld [vmem:[%s2434_s8] ss:$0 sm:$0xff] }
0x22d7   :  { %v1960_v60 = vpop.eup %1959 }
0x22d8   :  { %v1320_v61 = vadd.f32 1.0, %v1960_v60 }
0x22da   :  { %1961 = vrcp.f32 %v1320_v61 }
0x22e4   :  { %v1962_v48 = vpop.eup %1961 }
0x22e5   :  { %v1323_v5 = vmul.f32 2.0, %v1962_v48  ;;  %v1325_v42 = vmul.f32 %v1962_v48, %v1262_v46 }
0x22e7   :  { %v1637_v8 = vadd.f32 -1.0, %v1323_v5 }
0x22e9   :  { %1327 = vrot.lane.b32.xlu1 %v1637_v8, %s2004_s1 }
0x235b   :  { %v1328_v62 = vpop.permute.xlu1 %1327 }
0x235c   :  { %v1330_v15 = vmul.f32 %v1962_v48, %v1328_v62 }
0x235e   :  { %1332 = vrot.lane.b32.xlu0 %v1330_v15, %s2005_s3 }
0x23d0   :  { %v1333_v3 = vpop.permute.xlu0 %1332 }
0x23d1   :  { %v1335_v6 = vadd.f32 %v1333_v3, %v1325_v42 }
0x23d3   :  { %1963 = vtanh.f32 %v1335_v6 }
0x23dd   :  { %v1964_v7 = vpop.eup %1963 }
0x23de   :  { %1338 = vrot.lane.b32.xlu1 %v1964_v7, %s2004_s1 }
0x2450   :  { %v1339_v30 = vpop.permute.xlu1 %1338 }
0x2451   :  { %v1341_v22 = vmul.f32 %v1962_v48, %v1339_v30 }
0x2453   :  { %v1342_v9 = vpack.c.bf16 %v1341_v22, %v1341_v22 }
0x2455   :  { %1344 = vrot.lane.b32.xlu0 %v1342_v9, %s2005_s3 }
0x24c7   :  { %v1345_v10 = vpop.permute.xlu0 %1344 }
0x24c8   :  { %1842 = vmatmul.mubr.msk.bf16.vlgmr.msra.gmra.mrb[32].mxu0 %vm128_vm1, %v1345_v10 }
0x24c9   :  { %1857 = vmatprep.mubr.msk.bf16.mxu0 %vm2002_vm0, %v2001_v1  ;;  %1854 = vmatpush3.bf16.msra.mxu0 %v1879_v51 }
0x24ca   :  { %1855 = vmatprep.subr.bf16.mxu0 %v2001_v1 }
0x24cd   :  { %1856 = vmatpush3.bf16.msra.mxu0 %v1880_v52 }
0x259b   :  { %v1383_v63 = vpop.f32.mrb[32].mxu0 }
0x259c   :  { %v1389_v13 = vadd.f32 %v1383_v63, %v893_v12  ;;  %v1843_v14 = vpop.f32.mrb[33].mxu0 }
0x259d   :  { %v1386_v55 = vpop.f32.mrb[34].mxu0 }
0x259e   :  { %v1639_v17 = vmul.f32 -1.442695, %v1389_v13  ;;  %v1844_v19 = vpop.f32.mrb[35].mxu0 }
0x25a0   :  { %1965 = vpow2.f32 %v1639_v17 }
0x25aa   :  { %v1966_v23 = vpop.eup %1965 }
0x25ab   :  { %v1393_v20 = vadd.f32 1.0, %v1966_v23 }
0x25ad   :  { %1967 = vrcp.f32 %v1393_v20 }
0x25b7   :  { %v1968_v16 = vpop.eup %1967 }
0x25b8   :  { %v1396_v11 = vmul.f32 2.0, %v1968_v16  ;;  %v1398_v38 = vmul.f32 %v1968_v16, %v1335_v6 }
0x25ba   :  { %v1640_v21 = vadd.f32 -1.0, %v1396_v11 }
0x25bc   :  { %1400 = vrot.lane.b32.xlu1 %v1640_v21, %s2004_s1 }
0x262e   :  { %v1401_v4 = vpop.permute.xlu1 %1400 }
0x262f   :  { %v1403_v24 = vmul.f32 %v1968_v16, %v1401_v4 }
0x2631   :  { %1405 = vrot.lane.b32.xlu0 %v1403_v24, %s2005_s3 }
0x26a3   :  { %v1406_v25 = vpop.permute.xlu0 %1405 }
0x26a4   :  { %v1408_v0 = vadd.f32 %v1406_v25, %v1398_v38 }
0x26a6   :  { %1969 = vtanh.f32 %v1408_v0 }
0x26b0   :  { %v1970_v27 = vpop.eup %1969 }
0x26b1   :  { %1411 = vrot.lane.b32.xlu1 %v1970_v27, %s2004_s1 }
0x2723   :  { %v1412_v28 = vpop.permute.xlu1 %1411 }
0x2724   :  { %v1414_v29 = vmul.f32 %v1968_v16, %v1412_v28 }
0x2726   :  { %v1415_v31 = vpack.c.bf16 %v1414_v29, %v1414_v29 }
0x2728   :  { %1417 = vrot.lane.b32.xlu0 %v1415_v31, %s2005_s3 }
0x279a   :  { %v1418_v2 = vpop.permute.xlu0 %1417 }
0x279b   :  { %1850 = vmatmul.mubr.msk.bf16.vlgmr.msra.gmra.mrb[32].mxu1 %vm128_vm1, %v1418_v2 }
0x286e   :  { %v1456_v33 = vpop.f32.mrb[32].mxu1 }
0x286f   :  { %v1462_v34 = vadd.f32 %v1456_v33, %v896_v32  ;;  %v1851_v35 = vpop.f32.mrb[33].mxu1 }
0x2870   :  { %v1459_v36 = vpop.f32.mrb[34].mxu1 }
0x2871   :  { %v1642_v37 = vmul.f32 -1.442695, %v1462_v34  ;;  %v1852_v41 = vpop.f32.mrb[35].mxu1 }
0x2873   :  { %1971 = vpow2.f32 %v1642_v37 }
0x287d   :  { %v1972_v43 = vpop.eup %1971 }
0x287e   :  { %v1466_v44 = vadd.f32 1.0, %v1972_v43 }
0x2880   :  { %1973 = vrcp.f32 %v1466_v44 }
0x288a   :  { %v1974_v39 = vpop.eup %1973 }
0x288b   :  { %v1469_v45 = vmul.f32 2.0, %v1974_v39  ;;  %v1471_v26 = vmul.f32 %v1974_v39, %v1408_v0 }
0x288d   :  { %v1643_v46 = vadd.f32 -1.0, %v1469_v45 }
0x288f   :  { %1473 = vrot.lane.b32.xlu1 %v1643_v46, %s2004_s1 }
0x2901   :  { %v1474_v47 = vpop.permute.xlu1 %1473 }
0x2902   :  { %v1476_v49 = vmul.f32 %v1974_v39, %v1474_v47 }
0x2904   :  { %1478 = vrot.lane.b32.xlu0 %v1476_v49, %s2005_s3 }
0x2976   :  { %v1479_v40 = vpop.permute.xlu0 %1478 }
0x2977   :  { %v1481_v50 = vadd.f32 %v1479_v40, %v1471_v26 }
0x2979   :  { %1975 = vtanh.f32 %v1481_v50 }
0x2983   :  { %v1976_v53 = vpop.eup %1975 }
0x2984   :  { %1484 = vrot.lane.b32.xlu1 %v1976_v53, %s2004_s1  ;;  %s1977_s1 = scalar_lea.vmem %s1566_s7, 128 }
0x2985   :  { %p1978_p0 = scmp.ne.s32.totalorder %s1566_s7, %s1977_s1  ;;  %p1983_p2 = scmp.lt.s32.totalorder %s1977_s1, %s1977_s1 }
0x2987   :  { %p1984_p3 = por %p1983_p2, %p1982_p1 }
0x2989   :  { %p1985_p4 = pnand %p1984_p3, %p1978_p0 }
0x29f6   :  { %v1485_v54 = vpop.permute.xlu1 %1484 }
0x29f7   :  { %v1487_v56 = vmul.f32 %v1974_v39, %v1485_v54 }
0x29f9   :  { %v1488_v57 = vpack.c.bf16 %v1487_v56, %v1487_v56 }
0x29fb   :  { %1501 = vrot.lane.b32.xlu0 %v1488_v57, %s2005_s3 }
0x2a6d   :  { %v1502_v58 = vpop.permute.xlu0 %1501 }
0x2a6e   :  { %1858 = vmatmul.mubr.msk.bf16.vlgmr.msra.gmra.mrb[36].mxu0 %vm128_vm1, %v1502_v58 }
0x2b41   :  { %v1552_v59 = vpop.f32.mrb[36].mxu0 }
0x2b42   :  { %v1553_v1 = vadd.f32 %v1644_v18, %v1552_v59  ;;  %v1859_v60 = vpop.f32.mrb[37].mxu0 }
0x2b43   :  { %v1555_v61 = vpop.f32.mrb[38].mxu0 }
0x2b44   :  { %1558 = vst [vmem:[#allocation3] sm:$0xff] %v1553_v1  ;;  %v1860_v48 = vpop.f32.mrb[39].mxu0 }
0x2b45   :  { %1988 = shalt.err (!%p1985_p4)
}
0x2b46   :  { %s1989_s8 = scalar_lea.hbm %s2435_s9, 128 }
0x2b47   :  { %p1990_p5 = scmp.ne.s32.totalorder %s2435_s9, %s1989_s8  ;;  %p1993_p6 = scmp.lt.u32.totalorder %s1989_s8, %s2435_s9 }
0x2b49   :  { %p1995_p7 = pnand %p1993_p6, %p1990_p5 }
0x2b4b   :  { %1998 = shalt.err (!%p1995_p7)
}
0x2b4c   :  { %1568 = dma.vmem_to_hbm [thread:$0]  %s1566_s7, 128, %s2435_s9, [#allocation4]  }
0x2b4d   :  { %1999 = dma.done.wait [#allocation4], 128  }
0x2b4e   :  { %2000 = vsyncadd [#allocation4], 4294967168 }
0x2b4f   :  { %1572 = vsyncpa [#allocation4], 1 }

</bundles_post_ra>
